<compile_context>
chip_gen: v7x
topology: tpu7x:2x2x1
jax: 0.10.0
libtpu: 0.0.40
codegen_flags: <defaults>
</compile_context>

<pallas_src>
import functools

import jax
import jax.numpy as jnp
from jax.experimental import pallas as pl
from jax.experimental.pallas import tpu as pltpu


# ---------------------------------------------------------------------------
# Helpers
# ---------------------------------------------------------------------------
def _divisor_tile(dim, candidates):
    """Largest candidate <= dim that divides dim, else None."""
    for c in candidates:
        if c <= dim and dim % c == 0:
            return c
    return None


def _row_tile(m, cap=512):
    """Token-axis tile: big divisor of m preferred; ragged fallback is safe
    (out-of-bounds output rows are dropped by Pallas)."""
    cands = tuple(c for c in (cap, 512, 256, 128, 64, 32, 16, 8) if c <= cap)
    t = _divisor_tile(m, cands)
    return t if t is not None else min(m, 128)


def _head_group_dim(d, dh):
    """Feature-axis group: whole heads, lane-aligned (multiple of 128) or full d."""
    if d <= 128:
        return d
    g = dh
    while g < d and (g % 128 != 0 or d % g != 0):
        g += dh
    if d % g != 0:
        g = d
    return g


@functools.lru_cache(maxsize=None)
def _vmem_limit_bytes():
    # Per-generation budget: ~3/4 of physical VMEM (~48 MiB on v7x,
    # ~96 MiB on v5e/v6e).  Conservative fallback if the query fails.
    try:
        cap = pltpu.get_tpu_info().vmem_capacity_bytes
        return int(cap * 3 // 4)
    except Exception:
        return 64 * 1024 * 1024


def _compiler_params(semantics):
    return pltpu.CompilerParams(
        dimension_semantics=semantics,
        vmem_limit_bytes=_vmem_limit_bytes(),
    )


def _silu_f32(x):
    x = x.astype(jnp.float32)
    # exp lands on the EUP; the divide is cheap relative to DMA/MXU here.
    return x * (1.0 / (1.0 + jnp.exp(-x)))


# ---------------------------------------------------------------------------
# Kernel 1: tiled matmul + bias (qkvu projection).
# ---------------------------------------------------------------------------
def _mm_bias_kernel(x_ref, w_ref, b_ref, o_ref, acc_ref):
    @pl.when(pl.program_id(2) == 0)
    def _():
        acc_ref[...] = jnp.zeros_like(acc_ref)

    acc_ref[...] += jnp.dot(x_ref[...], w_ref[...],
                            preferred_element_type=jnp.float32)

    @pl.when(pl.program_id(2) == pl.num_programs(2) - 1)
    def _():
        o_ref[...] = (acc_ref[...] + b_ref[...].astype(jnp.float32)).astype(o_ref.dtype)


def matmul_bias(x, w, b):
    m, k = x.shape
    _, n = w.shape
    tm = _row_tile(m, cap=512)
    tn = _divisor_tile(n, (512, 256, 128)) or n
    tk = _divisor_tile(k, (512, 256, 128)) or k     # K must divide (reduction axis)
    grid = (pl.cdiv(m, tm), n // tn, k // tk)
    return pl.pallas_call(
        _mm_bias_kernel,
        out_shape=jax.ShapeDtypeStruct((m, n), x.dtype),
        grid_spec=pltpu.PrefetchScalarGridSpec(
            num_scalar_prefetch=0,
            grid=grid,
            in_specs=[
                pl.BlockSpec((tm, tk), lambda i, j, kk: (i, kk)),
                pl.BlockSpec((tk, tn), lambda i, j, kk: (kk, j)),
                pl.BlockSpec((1, tn), lambda i, j, kk: (0, j)),
            ],
            out_specs=pl.BlockSpec((tm, tn), lambda i, j, kk: (i, j)),
            scratch_shapes=[pltpu.VMEM((tm, tn), jnp.float32)],
        ),
        compiler_params=_compiler_params(("parallel", "parallel", "arbitrary")),
    )(x, w, b.reshape(1, n))


# ---------------------------------------------------------------------------
# Kernel 2: kv-state accumulation over key tiles (per batch, head-group).
# Accumulates directly into the VMEM-resident output blocks (reduction axis
# last + "arbitrary"); k-side SiLU/LRPE executed exactly once per key.
# ---------------------------------------------------------------------------
def _kv_kernel(k_ref, v_ref, c_ref, s_ref, m_ref, kvc_ref, kvs_ref, *, n_tokens, tk):
    ki = pl.program_id(2)

    @pl.when(ki == 0)
    def _():
        kvc_ref[...] = jnp.zeros_like(kvc_ref)
        kvs_ref[...] = jnp.zeros_like(kvs_ref)

    k = _silu_f32(k_ref[...])
    v = v_ref[...].astype(jnp.float32)
    kc = k * c_ref[...]
    ks = k * s_ref[...]

    if n_tokens % tk != 0:  # static: mask the ragged last key tile
        rows = jax.lax.broadcasted_iota(jnp.int32, kc.shape, 0) + ki * tk
        valid = rows < n_tokens
        kc = jnp.where(valid, kc, 0.0)
        ks = jnp.where(valid, ks, 0.0)
        v = jnp.where(valid, v, 0.0)

    dn = (((0,), (0,)), ((), ()))   # contract the token axis: kc^T @ v -> (dg, dg)
    kvc_ref[...] += jax.lax.dot_general(kc, v, dn, preferred_element_type=jnp.float32)
    kvs_ref[...] += jax.lax.dot_general(ks, v, dn, preferred_element_type=jnp.float32)

    @pl.when(ki == pl.num_programs(2) - 1)
    def _():
        # Keep only the per-head (block-diagonal) part of the group state.
        kvc_ref[...] = kvc_ref[...] * m_ref[...]
        kvs_ref[...] = kvs_ref[...] * m_ref[...]


def kv_state(k3, v3, cos_t, sin_t, mask, *, dg):
    b, n, d = k3.shape
    g = d // dg
    tk = _divisor_tile(n, (512, 256, 128, 64, 32, 16, 8))
    if tk is None:
        tk = min(n, 256)
    grid = (b, g, pl.cdiv(n, tk))
    kernel = functools.partial(_kv_kernel, n_tokens=n, tk=tk)
    return pl.pallas_call(
        kernel,
        out_shape=(jax.ShapeDtypeStruct((b, g, dg, dg), jnp.float32),
                   jax.ShapeDtypeStruct((b, g, dg, dg), jnp.float32)),
        grid_spec=pltpu.PrefetchScalarGridSpec(
            num_scalar_prefetch=0,
            grid=grid,
            in_specs=[
                pl.BlockSpec((None, tk, dg), lambda bi, gi, ki: (bi, ki, gi)),
                pl.BlockSpec((None, tk, dg), lambda bi, gi, ki: (bi, ki, gi)),
                pl.BlockSpec((tk, dg), lambda bi, gi, ki: (ki, gi)),
                pl.BlockSpec((tk, dg), lambda bi, gi, ki: (ki, gi)),
                pl.BlockSpec((dg, dg), lambda bi, gi, ki: (0, 0)),
            ],
            out_specs=[
                pl.BlockSpec((None, None, dg, dg), lambda bi, gi, ki: (bi, gi, 0, 0)),
                pl.BlockSpec((None, None, dg, dg), lambda bi, gi, ki: (bi, gi, 0, 0)),
            ],
        ),
        compiler_params=_compiler_params(("parallel", "parallel", "arbitrary")),
    )(k3, v3, cos_t, sin_t, mask)


# ---------------------------------------------------------------------------
# Kernel 3: apply q-side SiLU + LRPE and q @ kv.  kv blocks stay resident
# across the query-tile axis; output written lane-dense in (b, n, d) layout.
# ---------------------------------------------------------------------------
def _apply_kernel(q_ref, c_ref, s_ref, kvc_ref, kvs_ref, o_ref):
    q = _silu_f32(q_ref[...])
    qc = q * c_ref[...]
    qs = q * s_ref[...]
    out = jnp.dot(qc, kvc_ref[...], preferred_element_type=jnp.float32)
    out = out + jnp.dot(qs, kvs_ref[...], preferred_element_type=jnp.float32)
    o_ref[...] = out.astype(o_ref.dtype)


def apply_attention(q3, cos_t, sin_t, kvc, kvs, *, dg):
    b, n, d = q3.shape
    g = d // dg
    tm = _divisor_tile(n, (512, 256, 128, 64, 32, 16, 8)) or min(n, 256)
    grid = (b, g, pl.cdiv(n, tm))
    return pl.pallas_call(
        _apply_kernel,
        out_shape=jax.ShapeDtypeStruct((b, n, d), q3.dtype),
        grid_spec=pltpu.PrefetchScalarGridSpec(
            num_scalar_prefetch=0,
            grid=grid,
            in_specs=[
                pl.BlockSpec((None, tm, dg), lambda bi, gi, mi: (bi, mi, gi)),
                pl.BlockSpec((tm, dg), lambda bi, gi, mi: (mi, gi)),
                pl.BlockSpec((tm, dg), lambda bi, gi, mi: (mi, gi)),
                pl.BlockSpec((None, None, dg, dg), lambda bi, gi, mi: (bi, gi, 0, 0)),
                pl.BlockSpec((None, None, dg, dg), lambda bi, gi, mi: (bi, gi, 0, 0)),
            ],
            out_specs=pl.BlockSpec((None, tm, dg), lambda bi, gi, mi: (bi, mi, gi)),
        ),
        compiler_params=_compiler_params(("parallel", "parallel", "parallel")),
    )(q3, cos_t, sin_t, kvc, kvs)


# ---------------------------------------------------------------------------
# Kernel 4: fused LayerNorm + u-gate + output projection.  The normalized,
# gated row tile is cached in VMEM scratch and reused for every output tile.
# ---------------------------------------------------------------------------
def _ln_gate_proj_kernel(x_ref, u_ref, g_ref, b2_ref, w_ref, bo_ref, o_ref, y_ref, *, eps):
    @pl.when(pl.program_id(1) == 0)
    def _():
        x = x_ref[...].astype(jnp.float32)
        u = u_ref[...].astype(jnp.float32)
        mean = jnp.mean(x, axis=-1, keepdims=True)
        xc = x - mean
        var = jnp.mean(xc * xc, axis=-1, keepdims=True)
        y = xc * jax.lax.rsqrt(var + eps)
        y = y * g_ref[...].astype(jnp.float32) + b2_ref[...].astype(jnp.float32)
        y_ref[...] = (y * u).astype(y_ref.dtype)

    out = jnp.dot(y_ref[...], w_ref[...], preferred_element_type=jnp.float32)
    out = out + bo_ref[...].astype(jnp.float32)
    o_ref[...] = out.astype(o_ref.dtype)


def ln_gate_proj(x, u, gamma, beta, w, b, *, eps=1e-5, compute_dtype=jnp.float32):
    m, d = x.shape
    _, n_out = w.shape
    tm = _row_tile(m, cap=256)
    tn = _divisor_tile(n_out, (512, 256, 128)) or n_out
    grid = (pl.cdiv(m, tm), n_out // tn)
    return pl.pallas_call(
        functools.partial(_ln_gate_proj_kernel, eps=eps),
        out_shape=jax.ShapeDtypeStruct((m, n_out), x.dtype),
        grid_spec=pltpu.PrefetchScalarGridSpec(
            num_scalar_prefetch=0,
            grid=grid,
            in_specs=[
                pl.BlockSpec((tm, d), lambda i, j: (i, 0)),   # resident across j
                pl.BlockSpec((tm, d), lambda i, j: (i, 0)),   # resident across j
                pl.BlockSpec((1, d), lambda i, j: (0, 0)),
                pl.BlockSpec((1, d), lambda i, j: (0, 0)),
                pl.BlockSpec((d, tn), lambda i, j: (0, j)),
                pl.BlockSpec((1, tn), lambda i, j: (0, j)),
            ],
            out_specs=pl.BlockSpec((tm, tn), lambda i, j: (i, j)),
            scratch_shapes=[pltpu.VMEM((tm, d), compute_dtype)],
        ),
        compiler_params=_compiler_params(("parallel", "arbitrary")),
    )(x, u, gamma.reshape(1, d), beta.reshape(1, d), w, b.reshape(1, n_out))


# ---------------------------------------------------------------------------
# Full module forward (layer=0 default -> forward_left).  The unused `context`
# argument and the (unused-in-forward) abs_clamp/clip are omitted.
# ---------------------------------------------------------------------------
@functools.partial(jax.jit, static_argnames=("n_head", "use_bf16"))
def norm_linear_attention(x, params, *, n_head, use_bf16=False):
    bsz, n, d = x.shape
    dh = d // n_head
    orig_dtype = x.dtype
    cdt = jnp.bfloat16 if use_bf16 else jnp.float32

    # Cast activations / weights once in the wrapper (not per-tile in-kernel).
    x2d = x.reshape(bsz * n, d).astype(cdt)
    w_qkvu = params["w_qkvu"].astype(cdt)
    w_out = params["w_out"].astype(cdt)

    # 1) fused qkvu projection
    qkvu = matmul_bias(x2d, w_qkvu, params["b_qkvu"])
    q2d, k2d, v2d, u2d = jnp.split(qkvu, 4, axis=-1)
    q3 = q2d.reshape(bsz, n, d)
    k3 = k2d.reshape(bsz, n, d)
    v3 = v2d.reshape(bsz, n, d)

    # LRPE angle tables flattened over (head, dim-in-head) -> (n, d); tiny.
    pos = jnp.arange(n, dtype=jnp.float32)[:, None]
    theta_f = params["theta"].astype(jnp.float32).reshape(1, d)
    ang = pos * theta_f
    cos_t, sin_t = jnp.cos(ang), jnp.sin(ang)

    # Head-group tiling of the feature axis (lane-aligned), block-diag mask.
    dg = _head_group_dim(d, dh)
    idx = jnp.arange(dg) // dh
    mask = (idx[:, None] == idx[None, :]).astype(jnp.float32)

    # 2) kv state per (batch, head-group), 3) apply to queries.
    kvc, kvs = kv_state(k3, v3, cos_t, sin_t, mask, dg=dg)
    attn = apply_attention(q3, cos_t, sin_t, kvc, kvs, dg=dg)   # (b, n, d)

    # 4) LayerNorm + u-gate + output projection (token-major slab, no transposes).
    out2d = ln_gate_proj(attn.reshape(bsz * n, d), u2d, params["gamma"],
                         params["beta"], w_out, params["b_out"],
                         eps=1e-5, compute_dtype=cdt)
    return out2d.reshape(bsz, n, d).astype(orig_dtype)


def init_params(key, hidden, heads, dtype=jnp.float32):
    # Note: in the PyTorch module `bias=(bias,)` is a truthy tuple, so both
    # Linear layers effectively have biases; we include them.
    d_head = hidden // heads
    k1, k2, k3, k4 = jax.random.split(key, 4)
    s = 1.0 / (hidden ** 0.5)
    w_qkvu = jax.random.uniform(k1, (hidden, 4 * hidden), dtype, -s, s)  # (in, out)
    b_qkvu = jax.random.uniform(k2, (4 * hidden,), dtype, -s, s)
    w_out = jax.random.uniform(k3, (hidden, hidden), dtype, -s, s)
    b_out = jax.random.uniform(k4, (hidden,), dtype, -s, s)
    theta = (10000.0 ** (-2.0 / hidden * jnp.arange(hidden, dtype=dtype))
             ).reshape(heads, d_head)
    gamma = jnp.ones((hidden,), dtype)   # LayerNorm default init
    beta = jnp.zeros((hidden,), dtype)
    return dict(w_qkvu=w_qkvu, b_qkvu=b_qkvu, theta=theta, gamma=gamma,
                beta=beta, w_out=w_out, b_out=b_out)


def _reference(x, params, n_head):
    # Pure-JAX mirror of NormLinearAttention.forward_left (high precision).
    bsz, n, d = x.shape
    h = n_head
    dh = d // h
    hp = jax.lax.Precision.HIGHEST
    qkvu = jnp.einsum("bnd,de->bne", x, params["w_qkvu"], precision=hp) + params["b_qkvu"]
    q, k, v, u = jnp.split(qkvu, 4, axis=-1)

    def to_bhnd(t):
        return t.reshape(bsz, n, h, dh).transpose(0, 2, 1, 3)

    q, k, v = to_bhnd(q), to_bhnd(k), to_bhnd(v)
    q = jax.nn.silu(q)
    k = jax.nn.silu(k)
    pos = jnp.arange(n, dtype=jnp.float32)[None, :, None]
    ang = params["theta"][:, None, :] * pos                     # (h, n, dh)

    def lrpe(t):
        return jnp.concatenate([t * jnp.cos(ang), t * jnp.sin(ang)], axis=-1)

    q, k = lrpe(q), lrpe(k)
    qk = jnp.einsum("bhmd,bhnd->bhmn", q, k, precision=hp)
    o = jnp.einsum("bhmn,bhne->bhme", qk, v, precision=hp)
    o = o.transpose(0, 2, 1, 3).reshape(bsz, n, d)
    mean = o.mean(-1, keepdims=True)
    var = ((o - mean) ** 2).mean(-1, keepdims=True)
    o = (o - mean) * jax.lax.rsqrt(var + 1e-5) * params["gamma"] + params["beta"]
    o = u * o
    o = jnp.einsum("bnd,de->bne", o, params["w_out"], precision=hp) + params["b_out"]
    return o


if __name__ == "__main__":
    key = jax.random.PRNGKey(0)
    kx, kp = jax.random.split(key)

    batch, seq, hidden, heads = 2, 8, 64, 4   # d_head = 16
    x = jax.random.normal(kx, (batch, seq, hidden), jnp.float32)
    params = init_params(kp, hidden, heads)

    out = jax.block_until_ready(norm_linear_attention(x, params, n_head=heads))

    ref = _reference(x, params, heads)
    assert out.shape == (batch, seq, hidden)
    max_err = float(jnp.max(jnp.abs(out - ref)))
    assert jnp.allclose(out, ref, atol=2e-3, rtol=2e-3), f"max abs err {max_err}"

    print("KERNEL_OK")
</pallas_src>

<mosaic_0001>
module attributes {stable_mosaic.version = 11 : i64} {
  func.func @_mm_bias_kernel(%arg0: i32, %arg1: i32, %arg2: i32, %arg3: memref<16x64xf32, #tpu.memory_space<vmem>>, %arg4: memref<64x256xf32, #tpu.memory_space<vmem>>, %arg5: memref<1x256xf32, #tpu.memory_space<vmem>>, %arg6: memref<16x256xf32, #tpu.memory_space<vmem>>, %arg7: memref<16x256xf32, #tpu.memory_space<vmem>>) attributes {dimension_semantics = [#tpu.dimension_semantics<parallel>, #tpu.dimension_semantics<parallel>, #tpu.dimension_semantics<arbitrary>], iteration_bounds = array<i64: 1, 1, 1>, scalar_prefetch = 0 : i64, scratch_operands = 1 : i64, tpu.core_type = #tpu.core_type<tc>, window_params = [{transform_indices = @transform_0, window_bounds = array<i64: 16, 64>}, {transform_indices = @transform_1, window_bounds = array<i64: 64, 256>}, {transform_indices = @transform_2, window_bounds = array<i64: 1, 256>}, {transform_indices = @transform_3, window_bounds = array<i64: 16, 256>}]} {
    %c0_i32 = arith.constant 0 : i32
    %0 = arith.cmpi eq, %arg2, %c0_i32 : i32
    %1 = arith.extui %0 : i1 to i32
    %c0_i32_0 = arith.constant 0 : i32
    %2 = arith.cmpi ne, %1, %c0_i32_0 : i32
    scf.if %2 {
      %cst_10 = arith.constant 0.000000e+00 : f32
      %12 = vector.broadcast %cst_10 : f32 to vector<16x256xf32>
      %c0_11 = arith.constant 0 : index
      %c0_12 = arith.constant 0 : index
      %13 = vector.load %arg7[%c0_11, %c0_12] : memref<16x256xf32, #tpu.memory_space<vmem>>, vector<16x256xf32>
      tpu.vector_store %arg7[%c0_11, %c0_12], %12 {strides = array<i32>} : memref<16x256xf32, #tpu.memory_space<vmem>>, vector<16x256xf32>,
    } else {
    }
    %c0 = arith.constant 0 : index
    %c0_1 = arith.constant 0 : index
    %3 = vector.load %arg7[%c0, %c0_1] : memref<16x256xf32, #tpu.memory_space<vmem>>, vector<16x256xf32>
    %c0_2 = arith.constant 0 : index
    %c0_3 = arith.constant 0 : index
    %4 = vector.load %arg3[%c0_2, %c0_3] : memref<16x64xf32, #tpu.memory_space<vmem>>, vector<16x64xf32>
    %c0_4 = arith.constant 0 : index
    %c0_5 = arith.constant 0 : index
    %5 = vector.load %arg4[%c0_4, %c0_5] : memref<64x256xf32, #tpu.memory_space<vmem>>, vector<64x256xf32>
    %cst = arith.constant dense<0.000000e+00> : vector<16x256xf32>
    %6 = tpu.matmul %4, %5, %cst {dimension_numbers = #tpu.dot_dimension_numbers<[1], [0], [0], [1], [0, 0, 1, 1], [], []>} : vector<16x64xf32>, vector<64x256xf32>, vector<16x256xf32> -> vector<16x256xf32>
    %7 = arith.addf %3, %6 : vector<16x256xf32>
    %c0_6 = arith.constant 0 : index
    %c0_7 = arith.constant 0 : index
    %8 = vector.load %arg7[%c0_6, %c0_7] : memref<16x256xf32, #tpu.memory_space<vmem>>, vector<16x256xf32>
    tpu.vector_store %arg7[%c0_6, %c0_7], %7 {strides = array<i32>} : memref<16x256xf32, #tpu.memory_space<vmem>>, vector<16x256xf32>,
    %c0_i32_8 = arith.constant 0 : i32
    %9 = arith.cmpi eq, %arg2, %c0_i32_8 : i32
    %10 = arith.extui %9 : i1 to i32
    %c0_i32_9 = arith.constant 0 : i32
    %11 = arith.cmpi ne, %10, %c0_i32_9 : i32
    scf.if %11 {
      %c0_10 = arith.constant 0 : index
      %c0_11 = arith.constant 0 : index
      %12 = vector.load %arg7[%c0_10, %c0_11] : memref<16x256xf32, #tpu.memory_space<vmem>>, vector<16x256xf32>
      %c0_12 = arith.constant 0 : index
      %c0_13 = arith.constant 0 : index
      %13 = vector.load %arg5[%c0_12, %c0_13] : memref<1x256xf32, #tpu.memory_space<vmem>>, vector<1x256xf32>
      %14 = vector.broadcast %13 : vector<1x256xf32> to vector<16x256xf32>
      %15 = arith.addf %12, %14 : vector<16x256xf32>
      %c0_14 = arith.constant 0 : index
      %c0_15 = arith.constant 0 : index
      %16 = vector.load %arg6[%c0_14, %c0_15] : memref<16x256xf32, #tpu.memory_space<vmem>>, vector<16x256xf32>
      tpu.vector_store %arg6[%c0_14, %c0_15], %15 {strides = array<i32>} : memref<16x256xf32, #tpu.memory_space<vmem>>, vector<16x256xf32>,
    } else {
    }
    return
  }
  func.func @transform_0(%arg0: i32, %arg1: i32, %arg2: i32) -> (i32, i32) {
    %c0_i32 = arith.constant 0 : i32
    return %arg0, %arg2 : i32, i32
  }
  func.func @transform_1(%arg0: i32, %arg1: i32, %arg2: i32) -> (i32, i32) {
    %c0_i32 = arith.constant 0 : i32
    return %arg2, %arg1 : i32, i32
  }
  func.func @transform_2(%arg0: i32, %arg1: i32, %arg2: i32) -> (i32, i32) {
    %c0_i32 = arith.constant 0 : i32
    %c0_i32_0 = arith.constant 0 : i32
    return %c0_i32, %arg1 : i32, i32
  }
  func.func @transform_3(%arg0: i32, %arg1: i32, %arg2: i32) -> (i32, i32) {
    %c0_i32 = arith.constant 0 : i32
    return %arg0, %arg1 : i32, i32
  }
}

module attributes {stable_mosaic.version = 11 : i64} {
  func.func @_kv_kernel(%arg0: i32, %arg1: i32, %arg2: i32, %arg3: memref<1x8x64xf32, #tpu.memory_space<vmem>>, %arg4: memref<1x8x64xf32, #tpu.memory_space<vmem>>, %arg5: memref<8x64xf32, #tpu.memory_space<vmem>>, %arg6: memref<8x64xf32, #tpu.memory_space<vmem>>, %arg7: memref<64x64xf32, #tpu.memory_space<vmem>>, %arg8: memref<1x1x64x64xf32, #tpu.memory_space<vmem>>, %arg9: memref<1x1x64x64xf32, #tpu.memory_space<vmem>>) attributes {dimension_semantics = [#tpu.dimension_semantics<parallel>, #tpu.dimension_semantics<parallel>, #tpu.dimension_semantics<arbitrary>], iteration_bounds = array<i64: 2, 1, 1>, scalar_prefetch = 0 : i64, scratch_operands = 0 : i64, tpu.core_type = #tpu.core_type<tc>, window_params = [{transform_indices = @transform_0, window_bounds = array<i64: 1, 8, 64>}, {transform_indices = @transform_1, window_bounds = array<i64: 1, 8, 64>}, {transform_indices = @transform_2, window_bounds = array<i64: 8, 64>}, {transform_indices = @transform_3, window_bounds = array<i64: 8, 64>}, {pipeline_mode = #tpu.pipeline_mode<synchronous>, transform_indices = @transform_4, window_bounds = array<i64: 64, 64>}, {transform_indices = @transform_5, window_bounds = array<i64: 1, 1, 64, 64>}, {transform_indices = @transform_6, window_bounds = array<i64: 1, 1, 64, 64>}]} {
    %c0_i32 = arith.constant 0 : i32
    %0 = arith.cmpi eq, %arg2, %c0_i32 : i32
    %1 = arith.extui %0 : i1 to i32
    %c0_i32_0 = arith.constant 0 : i32
    %2 = arith.cmpi ne, %1, %c0_i32_0 : i32
    scf.if %2 {
      %cst_32 = arith.constant 0.000000e+00 : f32
      %36 = vector.broadcast %cst_32 : f32 to vector<64x64xf32>
      %c0_33 = arith.constant 0 : index
      %c0_34 = arith.constant 0 : index
      %c0_35 = arith.constant 0 : index
      %c0_36 = arith.constant 0 : index
      %37 = vector.load %arg8[%c0_33, %c0_34, %c0_35, %c0_36] : memref<1x1x64x64xf32, #tpu.memory_space<vmem>>, vector<1x1x64x64xf32>
      %38 = vector.shape_cast %37 : vector<1x1x64x64xf32> to vector<64x64xf32>
      %39 = vector.shape_cast %36 : vector<64x64xf32> to vector<1x1x64x64xf32>
      tpu.vector_store %arg8[%c0_33, %c0_34, %c0_35, %c0_36], %39 {strides = array<i32>} : memref<1x1x64x64xf32, #tpu.memory_space<vmem>>, vector<1x1x64x64xf32>,
      %cst_37 = arith.constant 0.000000e+00 : f32
      %40 = vector.broadcast %cst_37 : f32 to vector<64x64xf32>
      %c0_38 = arith.constant 0 : index
      %c0_39 = arith.constant 0 : index
      %c0_40 = arith.constant 0 : index
      %c0_41 = arith.constant 0 : index
      %41 = vector.load %arg9[%c0_38, %c0_39, %c0_40, %c0_41] : memref<1x1x64x64xf32, #tpu.memory_space<vmem>>, vector<1x1x64x64xf32>
      %42 = vector.shape_cast %41 : vector<1x1x64x64xf32> to vector<64x64xf32>
      %43 = vector.shape_cast %40 : vector<64x64xf32> to vector<1x1x64x64xf32>
      tpu.vector_store %arg9[%c0_38, %c0_39, %c0_40, %c0_41], %43 {strides = array<i32>} : memref<1x1x64x64xf32, #tpu.memory_space<vmem>>, vector<1x1x64x64xf32>,
    } else {
    }
    %c0 = arith.constant 0 : index
    %c0_1 = arith.constant 0 : index
    %c0_2 = arith.constant 0 : index
    %3 = vector.load %arg3[%c0, %c0_1, %c0_2] : memref<1x8x64xf32, #tpu.memory_space<vmem>>, vector<1x8x64xf32>
    %4 = vector.shape_cast %3 : vector<1x8x64xf32> to vector<8x64xf32>
    %cst = arith.constant 0.000000e+00 : f32
    %5 = vector.broadcast %cst : f32 to vector<8x64xf32>
    %6 = arith.subf %5, %4 : vector<8x64xf32>
    %7 = math.exp %6 : vector<8x64xf32>
    %cst_3 = arith.constant 1.000000e+00 : f32
    %8 = vector.broadcast %cst_3 : f32 to vector<8x64xf32>
    %9 = arith.addf %8, %7 : vector<8x64xf32>
    %cst_4 = arith.constant 1.000000e+00 : f32
    %10 = vector.broadcast %cst_4 : f32 to vector<8x64xf32>
    %11 = arith.divf %10, %9 : vector<8x64xf32>
    %12 = arith.mulf %4, %11 : vector<8x64xf32>
    %c0_5 = arith.constant 0 : index
    %c0_6 = arith.constant 0 : index
    %c0_7 = arith.constant 0 : index
    %13 = vector.load %arg4[%c0_5, %c0_6, %c0_7] : memref<1x8x64xf32, #tpu.memory_space<vmem>>, vector<1x8x64xf32>
    %14 = vector.shape_cast %13 : vector<1x8x64xf32> to vector<8x64xf32>
    %c0_8 = arith.constant 0 : index
    %c0_9 = arith.constant 0 : index
    %15 = vector.load %arg5[%c0_8, %c0_9] : memref<8x64xf32, #tpu.memory_space<vmem>>, vector<8x64xf32>
    %16 = arith.mulf %12, %15 : vector<8x64xf32>
    %c0_10 = arith.constant 0 : index
    %c0_11 = arith.constant 0 : index
    %17 = vector.load %arg6[%c0_10, %c0_11] : memref<8x64xf32, #tpu.memory_space<vmem>>, vector<8x64xf32>
    %18 = arith.mulf %12, %17 : vector<8x64xf32>
    %c0_12 = arith.constant 0 : index
    %c0_13 = arith.constant 0 : index
    %c0_14 = arith.constant 0 : index
    %c0_15 = arith.constant 0 : index
    %19 = vector.load %arg8[%c0_12, %c0_13, %c0_14, %c0_15] : memref<1x1x64x64xf32, #tpu.memory_space<vmem>>, vector<1x1x64x64xf32>
    %20 = vector.shape_cast %19 : vector<1x1x64x64xf32> to vector<64x64xf32>
    %cst_16 = arith.constant dense<0.000000e+00> : vector<64x64xf32>
    %21 = tpu.matmul %16, %14, %cst_16 {dimension_numbers = #tpu.dot_dimension_numbers<[0], [0], [1], [1], [0, 1, 1, 1], [], []>} : vector<8x64xf32>, vector<8x64xf32>, vector<64x64xf32> -> vector<64x64xf32>
    %22 = arith.addf %20, %21 : vector<64x64xf32>
    %c0_17 = arith.constant 0 : index
    %c0_18 = arith.constant 0 : index
    %c0_19 = arith.constant 0 : index
    %c0_20 = arith.constant 0 : index
    %23 = vector.load %arg8[%c0_17, %c0_18, %c0_19, %c0_20] : memref<1x1x64x64xf32, #tpu.memory_space<vmem>>, vector<1x1x64x64xf32>
    %24 = vector.shape_cast %23 : vector<1x1x64x64xf32> to vector<64x64xf32>
    %25 = vector.shape_cast %22 : vector<64x64xf32> to vector<1x1x64x64xf32>
    tpu.vector_store %arg8[%c0_17, %c0_18, %c0_19, %c0_20], %25 {strides = array<i32>} : memref<1x1x64x64xf32, #tpu.memory_space<vmem>>, vector<1x1x64x64xf32>,
    %c0_21 = arith.constant 0 : index
    %c0_22 = arith.constant 0 : index
    %c0_23 = arith.constant 0 : index
    %c0_24 = arith.constant 0 : index
    %26 = vector.load %arg9[%c0_21, %c0_22, %c0_23, %c0_24] : memref<1x1x64x64xf32, #tpu.memory_space<vmem>>, vector<1x1x64x64xf32>
    %27 = vector.shape_cast %26 : vector<1x1x64x64xf32> to vector<64x64xf32>
    %cst_25 = arith.constant dense<0.000000e+00> : vector<64x64xf32>
    %28 = tpu.matmul %18, %14, %cst_25 {dimension_numbers = #tpu.dot_dimension_numbers<[0], [0], [1], [1], [0, 1, 1, 1], [], []>} : vector<8x64xf32>, vector<8x64xf32>, vector<64x64xf32> -> vector<64x64xf32>
    %29 = arith.addf %27, %28 : vector<64x64xf32>
    %c0_26 = arith.constant 0 : index
    %c0_27 = arith.constant 0 : index
    %c0_28 = arith.constant 0 : index
    %c0_29 = arith.constant 0 : index
    %30 = vector.load %arg9[%c0_26, %c0_27, %c0_28, %c0_29] : memref<1x1x64x64xf32, #tpu.memory_space<vmem>>, vector<1x1x64x64xf32>
    %31 = vector.shape_cast %30 : vector<1x1x64x64xf32> to vector<64x64xf32>
    %32 = vector.shape_cast %29 : vector<64x64xf32> to vector<1x1x64x64xf32>
    tpu.vector_store %arg9[%c0_26, %c0_27, %c0_28, %c0_29], %32 {strides = array<i32>} : memref<1x1x64x64xf32, #tpu.memory_space<vmem>>, vector<1x1x64x64xf32>,
    %c0_i32_30 = arith.constant 0 : i32
    %33 = arith.cmpi eq, %arg2, %c0_i32_30 : i32
    %34 = arith.extui %33 : i1 to i32
    %c0_i32_31 = arith.constant 0 : i32
    %35 = arith.cmpi ne, %34, %c0_i32_31 : i32
    scf.if %35 {
      %c0_32 = arith.constant 0 : index
      %c0_33 = arith.constant 0 : index
      %c0_34 = arith.constant 0 : index
      %c0_35 = arith.constant 0 : index
      %36 = vector.load %arg8[%c0_32, %c0_33, %c0_34, %c0_35] : memref<1x1x64x64xf32, #tpu.memory_space<vmem>>, vector<1x1x64x64xf32>
      %37 = vector.shape_cast %36 : vector<1x1x64x64xf32> to vector<64x64xf32>
      %c0_36 = arith.constant 0 : index
      %c0_37 = arith.constant 0 : index
      %38 = vector.load %arg7[%c0_36, %c0_37] : memref<64x64xf32, #tpu.memory_space<vmem>>, vector<64x64xf32>
      %39 = arith.mulf %37, %38 : vector<64x64xf32>
      %c0_38 = arith.constant 0 : index
      %c0_39 = arith.constant 0 : index
      %c0_40 = arith.constant 0 : index
      %c0_41 = arith.constant 0 : index
      %40 = vector.load %arg8[%c0_38, %c0_39, %c0_40, %c0_41] : memref<1x1x64x64xf32, #tpu.memory_space<vmem>>, vector<1x1x64x64xf32>
      %41 = vector.shape_cast %40 : vector<1x1x64x64xf32> to vector<64x64xf32>
      %42 = vector.shape_cast %39 : vector<64x64xf32> to vector<1x1x64x64xf32>
      tpu.vector_store %arg8[%c0_38, %c0_39, %c0_40, %c0_41], %42 {strides = array<i32>} : memref<1x1x64x64xf32, #tpu.memory_space<vmem>>, vector<1x1x64x64xf32>,
      %c0_42 = arith.constant 0 : index
      %c0_43 = arith.constant 0 : index
      %c0_44 = arith.constant 0 : index
      %c0_45 = arith.constant 0 : index
      %43 = vector.load %arg9[%c0_42, %c0_43, %c0_44, %c0_45] : memref<1x1x64x64xf32, #tpu.memory_space<vmem>>, vector<1x1x64x64xf32>
      %44 = vector.shape_cast %43 : vector<1x1x64x64xf32> to vector<64x64xf32>
      %c0_46 = arith.constant 0 : index
      %c0_47 = arith.constant 0 : index
      %45 = vector.load %arg7[%c0_46, %c0_47] : memref<64x64xf32, #tpu.memory_space<vmem>>, vector<64x64xf32>
      %46 = arith.mulf %44, %45 : vector<64x64xf32>
      %c0_48 = arith.constant 0 : index
      %c0_49 = arith.constant 0 : index
      %c0_50 = arith.constant 0 : index
      %c0_51 = arith.constant 0 : index
      %47 = vector.load %arg9[%c0_48, %c0_49, %c0_50, %c0_51] : memref<1x1x64x64xf32, #tpu.memory_space<vmem>>, vector<1x1x64x64xf32>
      %48 = vector.shape_cast %47 : vector<1x1x64x64xf32> to vector<64x64xf32>
      %49 = vector.shape_cast %46 : vector<64x64xf32> to vector<1x1x64x64xf32>
      tpu.vector_store %arg9[%c0_48, %c0_49, %c0_50, %c0_51], %49 {strides = array<i32>} : memref<1x1x64x64xf32, #tpu.memory_space<vmem>>, vector<1x1x64x64xf32>,
    } else {
    }
    return
  }
  func.func @transform_0(%arg0: i32, %arg1: i32, %arg2: i32) -> (i32, i32, i32) {
    %c0_i32 = arith.constant 0 : i32
    return %arg0, %arg2, %arg1 : i32, i32, i32
  }
  func.func @transform_1(%arg0: i32, %arg1: i32, %arg2: i32) -> (i32, i32, i32) {
    %c0_i32 = arith.constant 0 : i32
    return %arg0, %arg2, %arg1 : i32, i32, i32
  }
  func.func @transform_2(%arg0: i32, %arg1: i32, %arg2: i32) -> (i32, i32) {
    %c0_i32 = arith.constant 0 : i32
    return %arg2, %arg1 : i32, i32
  }
  func.func @transform_3(%arg0: i32, %arg1: i32, %arg2: i32) -> (i32, i32) {
    %c0_i32 = arith.constant 0 : i32
    return %arg2, %arg1 : i32, i32
  }
  func.func @transform_4(%arg0: i32, %arg1: i32, %arg2: i32) -> (i32, i32) {
    %c0_i32 = arith.constant 0 : i32
    %c0_i32_0 = arith.constant 0 : i32
    %c0_i32_1 = arith.constant 0 : i32
    return %c0_i32, %c0_i32_0 : i32, i32
  }
  func.func @transform_5(%arg0: i32, %arg1: i32, %arg2: i32) -> (i32, i32, i32, i32) {
    %c0_i32 = arith.constant 0 : i32
    %c0_i32_0 = arith.constant 0 : i32
    %c0_i32_1 = arith.constant 0 : i32
    return %arg0, %arg1, %c0_i32, %c0_i32_0 : i32, i32, i32, i32
  }
  func.func @transform_6(%arg0: i32, %arg1: i32, %arg2: i32) -> (i32, i32, i32, i32) {
    %c0_i32 = arith.constant 0 : i32
    %c0_i32_0 = arith.constant 0 : i32
    %c0_i32_1 = arith.constant 0 : i32
    return %arg0, %arg1, %c0_i32, %c0_i32_0 : i32, i32, i32, i32
  }
}

module attributes {stable_mosaic.version = 11 : i64} {
  func.func @_apply_kernel(%arg0: i32, %arg1: i32, %arg2: i32, %arg3: memref<1x8x64xf32, #tpu.memory_space<vmem>>, %arg4: memref<8x64xf32, #tpu.memory_space<vmem>>, %arg5: memref<8x64xf32, #tpu.memory_space<vmem>>, %arg6: memref<1x1x64x64xf32, #tpu.memory_space<vmem>>, %arg7: memref<1x1x64x64xf32, #tpu.memory_space<vmem>>, %arg8: memref<1x8x64xf32, #tpu.memory_space<vmem>>) attributes {dimension_semantics = [#tpu.dimension_semantics<parallel>, #tpu.dimension_semantics<parallel>, #tpu.dimension_semantics<parallel>], iteration_bounds = array<i64: 2, 1, 1>, scalar_prefetch = 0 : i64, scratch_operands = 0 : i64, tpu.core_type = #tpu.core_type<tc>, window_params = [{transform_indices = @transform_0, window_bounds = array<i64: 1, 8, 64>}, {transform_indices = @transform_1, window_bounds = array<i64: 8, 64>}, {transform_indices = @transform_2, window_bounds = array<i64: 8, 64>}, {transform_indices = @transform_3, window_bounds = array<i64: 1, 1, 64, 64>}, {transform_indices = @transform_4, window_bounds = array<i64: 1, 1, 64, 64>}, {transform_indices = @transform_5, window_bounds = array<i64: 1, 8, 64>}]} {
    %c0 = arith.constant 0 : index
    %c0_0 = arith.constant 0 : index
    %c0_1 = arith.constant 0 : index
    %0 = vector.load %arg3[%c0, %c0_0, %c0_1] : memref<1x8x64xf32, #tpu.memory_space<vmem>>, vector<1x8x64xf32>
    %1 = vector.shape_cast %0 : vector<1x8x64xf32> to vector<8x64xf32>
    %cst = arith.constant 0.000000e+00 : f32
    %2 = vector.broadcast %cst : f32 to vector<8x64xf32>
    %3 = arith.subf %2, %1 : vector<8x64xf32>
    %4 = math.exp %3 : vector<8x64xf32>
    %cst_2 = arith.constant 1.000000e+00 : f32
    %5 = vector.broadcast %cst_2 : f32 to vector<8x64xf32>
    %6 = arith.addf %5, %4 : vector<8x64xf32>
    %cst_3 = arith.constant 1.000000e+00 : f32
    %7 = vector.broadcast %cst_3 : f32 to vector<8x64xf32>
    %8 = arith.divf %7, %6 : vector<8x64xf32>
    %9 = arith.mulf %1, %8 : vector<8x64xf32>
    %c0_4 = arith.constant 0 : index
    %c0_5 = arith.constant 0 : index
    %10 = vector.load %arg4[%c0_4, %c0_5] : memref<8x64xf32, #tpu.memory_space<vmem>>, vector<8x64xf32>
    %11 = arith.mulf %9, %10 : vector<8x64xf32>
    %c0_6 = arith.constant 0 : index
    %c0_7 = arith.constant 0 : index
    %12 = vector.load %arg5[%c0_6, %c0_7] : memref<8x64xf32, #tpu.memory_space<vmem>>, vector<8x64xf32>
    %13 = arith.mulf %9, %12 : vector<8x64xf32>
    %c0_8 = arith.constant 0 : index
    %c0_9 = arith.constant 0 : index
    %c0_10 = arith.constant 0 : index
    %c0_11 = arith.constant 0 : index
    %14 = vector.load %arg6[%c0_8, %c0_9, %c0_10, %c0_11] : memref<1x1x64x64xf32, #tpu.memory_space<vmem>>, vector<1x1x64x64xf32>
    %15 = vector.shape_cast %14 : vector<1x1x64x64xf32> to vector<64x64xf32>
    %cst_12 = arith.constant dense<0.000000e+00> : vector<8x64xf32>
    %16 = tpu.matmul %11, %15, %cst_12 {dimension_numbers = #tpu.dot_dimension_numbers<[1], [0], [0], [1], [0, 0, 1, 1], [], []>} : vector<8x64xf32>, vector<64x64xf32>, vector<8x64xf32> -> vector<8x64xf32>
    %c0_13 = arith.constant 0 : index
    %c0_14 = arith.constant 0 : index
    %c0_15 = arith.constant 0 : index
    %c0_16 = arith.constant 0 : index
    %17 = vector.load %arg7[%c0_13, %c0_14, %c0_15, %c0_16] : memref<1x1x64x64xf32, #tpu.memory_space<vmem>>, vector<1x1x64x64xf32>
    %18 = vector.shape_cast %17 : vector<1x1x64x64xf32> to vector<64x64xf32>
    %cst_17 = arith.constant dense<0.000000e+00> : vector<8x64xf32>
    %19 = tpu.matmul %13, %18, %cst_17 {dimension_numbers = #tpu.dot_dimension_numbers<[1], [0], [0], [1], [0, 0, 1, 1], [], []>} : vector<8x64xf32>, vector<64x64xf32>, vector<8x64xf32> -> vector<8x64xf32>
    %20 = arith.addf %16, %19 : vector<8x64xf32>
    %c0_18 = arith.constant 0 : index
    %c0_19 = arith.constant 0 : index
    %c0_20 = arith.constant 0 : index
    %21 = vector.load %arg8[%c0_18, %c0_19, %c0_20] : memref<1x8x64xf32, #tpu.memory_space<vmem>>, vector<1x8x64xf32>
    %22 = vector.shape_cast %21 : vector<1x8x64xf32> to vector<8x64xf32>
    %23 = vector.shape_cast %20 : vector<8x64xf32> to vector<1x8x64xf32>
    tpu.vector_store %arg8[%c0_18, %c0_19, %c0_20], %23 {strides = array<i32>} : memref<1x8x64xf32, #tpu.memory_space<vmem>>, vector<1x8x64xf32>,
    return
  }
  func.func @transform_0(%arg0: i32, %arg1: i32, %arg2: i32) -> (i32, i32, i32) {
    %c0_i32 = arith.constant 0 : i32
    return %arg0, %arg2, %arg1 : i32, i32, i32
  }
  func.func @transform_1(%arg0: i32, %arg1: i32, %arg2: i32) -> (i32, i32) {
    %c0_i32 = arith.constant 0 : i32
    return %arg2, %arg1 : i32, i32
  }
  func.func @transform_2(%arg0: i32, %arg1: i32, %arg2: i32) -> (i32, i32) {
    %c0_i32 = arith.constant 0 : i32
    return %arg2, %arg1 : i32, i32
  }
  func.func @transform_3(%arg0: i32, %arg1: i32, %arg2: i32) -> (i32, i32, i32, i32) {
    %c0_i32 = arith.constant 0 : i32
    %c0_i32_0 = arith.constant 0 : i32
    %c0_i32_1 = arith.constant 0 : i32
    return %arg0, %arg1, %c0_i32, %c0_i32_0 : i32, i32, i32, i32
  }
  func.func @transform_4(%arg0: i32, %arg1: i32, %arg2: i32) -> (i32, i32, i32, i32) {
    %c0_i32 = arith.constant 0 : i32
    %c0_i32_0 = arith.constant 0 : i32
    %c0_i32_1 = arith.constant 0 : i32
    return %arg0, %arg1, %c0_i32, %c0_i32_0 : i32, i32, i32, i32
  }
  func.func @transform_5(%arg0: i32, %arg1: i32, %arg2: i32) -> (i32, i32, i32) {
    %c0_i32 = arith.constant 0 : i32
    return %arg0, %arg2, %arg1 : i32, i32, i32
  }
}

module attributes {stable_mosaic.version = 11 : i64} {
  func.func @_ln_gate_proj_kernel(%arg0: i32, %arg1: i32, %arg2: memref<16x64xf32, #tpu.memory_space<vmem>>, %arg3: memref<16x64xf32, #tpu.memory_space<vmem>>, %arg4: memref<1x64xf32, #tpu.memory_space<vmem>>, %arg5: memref<1x64xf32, #tpu.memory_space<vmem>>, %arg6: memref<64x64xf32, #tpu.memory_space<vmem>>, %arg7: memref<1x64xf32, #tpu.memory_space<vmem>>, %arg8: memref<16x64xf32, #tpu.memory_space<vmem>>, %arg9: memref<16x64xf32, #tpu.memory_space<vmem>>) attributes {dimension_semantics = [#tpu.dimension_semantics<parallel>, #tpu.dimension_semantics<arbitrary>], iteration_bounds = array<i64: 1, 1>, scalar_prefetch = 0 : i64, scratch_operands = 1 : i64, tpu.core_type = #tpu.core_type<tc>, window_params = [{transform_indices = @transform_0, window_bounds = array<i64: 16, 64>}, {transform_indices = @transform_1, window_bounds = array<i64: 16, 64>}, {pipeline_mode = #tpu.pipeline_mode<synchronous>, transform_indices = @transform_2, window_bounds = array<i64: 1, 64>}, {pipeline_mode = #tpu.pipeline_mode<synchronous>, transform_indices = @transform_3, window_bounds = array<i64: 1, 64>}, {transform_indices = @transform_4, window_bounds = array<i64: 64, 64>}, {transform_indices = @transform_5, window_bounds = array<i64: 1, 64>}, {transform_indices = @transform_6, window_bounds = array<i64: 16, 64>}]} {
    %c0_i32 = arith.constant 0 : i32
    %0 = arith.cmpi eq, %arg1, %c0_i32 : i32
    %1 = arith.extui %0 : i1 to i32
    %c0_i32_0 = arith.constant 0 : i32
    %2 = arith.cmpi ne, %1, %c0_i32_0 : i32
    scf.if %2 {
      %c0_8 = arith.constant 0 : index
      %c0_9 = arith.constant 0 : index
      %10 = vector.load %arg2[%c0_8, %c0_9] : memref<16x64xf32, #tpu.memory_space<vmem>>, vector<16x64xf32>
      %c0_10 = arith.constant 0 : index
      %c0_11 = arith.constant 0 : index
      %11 = vector.load %arg3[%c0_10, %c0_11] : memref<16x64xf32, #tpu.memory_space<vmem>>, vector<16x64xf32>
      %cst_12 = arith.constant dense<0.000000e+00> : vector<16xf32>
      %12 = vector.multi_reduction <add>, %10, %cst_12 [1] : vector<16x64xf32> to vector<16xf32>
      %13 = vector.shape_cast %12 : vector<16xf32> to vector<16x1xf32>
      %cst_13 = arith.constant 6.400000e+01 : f32
      %14 = vector.broadcast %cst_13 : f32 to vector<16x1xf32>
      %15 = arith.divf %13, %14 : vector<16x1xf32>
      %16 = vector.broadcast %15 : vector<16x1xf32> to vector<16x64xf32>
      %17 = arith.subf %10, %16 : vector<16x64xf32>
      %18 = arith.mulf %17, %17 : vector<16x64xf32>
      %cst_14 = arith.constant dense<0.000000e+00> : vector<16xf32>
      %19 = vector.multi_reduction <add>, %18, %cst_14 [1] : vector<16x64xf32> to vector<16xf32>
      %20 = vector.shape_cast %19 : vector<16xf32> to vector<16x1xf32>
      %cst_15 = arith.constant 6.400000e+01 : f32
      %21 = vector.broadcast %cst_15 : f32 to vector<16x1xf32>
      %22 = arith.divf %20, %21 : vector<16x1xf32>
      %cst_16 = arith.constant 9.99999974E-6 : f32
      %23 = vector.broadcast %cst_16 : f32 to vector<16x1xf32>
      %24 = arith.addf %22, %23 : vector<16x1xf32>
      %25 = math.rsqrt %24 : vector<16x1xf32>
      %26 = vector.broadcast %25 : vector<16x1xf32> to vector<16x64xf32>
      %27 = arith.mulf %17, %26 : vector<16x64xf32>
      %c0_17 = arith.constant 0 : index
      %c0_18 = arith.constant 0 : index
      %28 = vector.load %arg4[%c0_17, %c0_18] : memref<1x64xf32, #tpu.memory_space<vmem>>, vector<1x64xf32>
      %29 = vector.broadcast %28 : vector<1x64xf32> to vector<16x64xf32>
      %30 = arith.mulf %27, %29 : vector<16x64xf32>
      %c0_19 = arith.constant 0 : index
      %c0_20 = arith.constant 0 : index
      %31 = vector.load %arg5[%c0_19, %c0_20] : memref<1x64xf32, #tpu.memory_space<vmem>>, vector<1x64xf32>
      %32 = vector.broadcast %31 : vector<1x64xf32> to vector<16x64xf32>
      %33 = arith.addf %30, %32 : vector<16x64xf32>
      %34 = arith.mulf %33, %11 : vector<16x64xf32>
      %c0_21 = arith.constant 0 : index
      %c0_22 = arith.constant 0 : index
      %35 = vector.load %arg9[%c0_21, %c0_22] : memref<16x64xf32, #tpu.memory_space<vmem>>, vector<16x64xf32>
      tpu.vector_store %arg9[%c0_21, %c0_22], %34 {strides = array<i32>} : memref<16x64xf32, #tpu.memory_space<vmem>>, vector<16x64xf32>,
    } else {
    }
    %c0 = arith.constant 0 : index
    %c0_1 = arith.constant 0 : index
    %3 = vector.load %arg9[%c0, %c0_1] : memref<16x64xf32, #tpu.memory_space<vmem>>, vector<16x64xf32>
    %c0_2 = arith.constant 0 : index
    %c0_3 = arith.constant 0 : index
    %4 = vector.load %arg6[%c0_2, %c0_3] : memref<64x64xf32, #tpu.memory_space<vmem>>, vector<64x64xf32>
    %cst = arith.constant dense<0.000000e+00> : vector<16x64xf32>
    %5 = tpu.matmul %3, %4, %cst {dimension_numbers = #tpu.dot_dimension_numbers<[1], [0], [0], [1], [0, 0, 1, 1], [], []>} : vector<16x64xf32>, vector<64x64xf32>, vector<16x64xf32> -> vector<16x64xf32>
    %c0_4 = arith.constant 0 : index
    %c0_5 = arith.constant 0 : index
    %6 = vector.load %arg7[%c0_4, %c0_5] : memref<1x64xf32, #tpu.memory_space<vmem>>, vector<1x64xf32>
    %7 = vector.broadcast %6 : vector<1x64xf32> to vector<16x64xf32>
    %8 = arith.addf %5, %7 : vector<16x64xf32>
    %c0_6 = arith.constant 0 : index
    %c0_7 = arith.constant 0 : index
    %9 = vector.load %arg8[%c0_6, %c0_7] : memref<16x64xf32, #tpu.memory_space<vmem>>, vector<16x64xf32>
    tpu.vector_store %arg8[%c0_6, %c0_7], %8 {strides = array<i32>} : memref<16x64xf32, #tpu.memory_space<vmem>>, vector<16x64xf32>,
    return
  }
  func.func @transform_0(%arg0: i32, %arg1: i32) -> (i32, i32) {
    %c0_i32 = arith.constant 0 : i32
    %c0_i32_0 = arith.constant 0 : i32
    return %arg0, %c0_i32 : i32, i32
  }
  func.func @transform_1(%arg0: i32, %arg1: i32) -> (i32, i32) {
    %c0_i32 = arith.constant 0 : i32
    %c0_i32_0 = arith.constant 0 : i32
    return %arg0, %c0_i32 : i32, i32
  }
  func.func @transform_2(%arg0: i32, %arg1: i32) -> (i32, i32) {
    %c0_i32 = arith.constant 0 : i32
    %c0_i32_0 = arith.constant 0 : i32
    %c0_i32_1 = arith.constant 0 : i32
    return %c0_i32, %c0_i32_0 : i32, i32
  }
  func.func @transform_3(%arg0: i32, %arg1: i32) -> (i32, i32) {
    %c0_i32 = arith.constant 0 : i32
    %c0_i32_0 = arith.constant 0 : i32
    %c0_i32_1 = arith.constant 0 : i32
    return %c0_i32, %c0_i32_0 : i32, i32
  }
  func.func @transform_4(%arg0: i32, %arg1: i32) -> (i32, i32) {
    %c0_i32 = arith.constant 0 : i32
    %c0_i32_0 = arith.constant 0 : i32
    return %c0_i32, %arg1 : i32, i32
  }
  func.func @transform_5(%arg0: i32, %arg1: i32) -> (i32, i32) {
    %c0_i32 = arith.constant 0 : i32
    %c0_i32_0 = arith.constant 0 : i32
    return %c0_i32, %arg1 : i32, i32
  }
  func.func @transform_6(%arg0: i32, %arg1: i32) -> (i32, i32) {
    %c0_i32 = arith.constant 0 : i32
    return %arg0, %arg1 : i32, i32
  }
}

</mosaic_0001>

<bundles_post_ra>
// kernel: mul.11
= control target key start
LH: loop header
LB: loop body
LE: loop exit
PB: predicated region body
PF: predicated region fallthrough
CT: control target
= control target key end

     0   :  { %vm7_vm0 = vcmask 130048   ;;  %s37_s8 = smov 16   ;;  %s38_s9 = smov 32   ;;  %vm13_vm1 = vcmask 523648   ;;  %vm19_vm2 = vcmask 392448   ;;  %vm25_vm3 = vcmask 261248   ;;  %s55_s0 = inlined_call_operand.vmem [shape: f32[4,16], index: 0, kind: input, shape index: {}]   ;;  %s56_s1 = inlined_call_operand.vmem [shape: f32[64], index: 1, kind: output, shape index: {}]  }
   0x1   :  { %v4_v0 = vld [vmem:[%s55_s0] sm:$0xf]  ;;  %s36_s0 = smov 48  }
   0x2   :  { %5 = vst [vmem:[#allocation1] sm:$0xf] %v4_v0 }
   0x9   :  { %v10_v1 = vld [vmem:[#allocation1 + $0x3] sm:$0x1]   ;;  %v22_v2 = vld [vmem:[#allocation1 + $0x1] sm:$0x1]   ;;  %v6_v3 = vld [vmem:[#allocation1] sm:$0x1]  }
   0xa   :  { %11 = vrot.lane.b32.xlu0 %v10_v1, %s36_s0  ;;  %23 = vrot.lane.b32.xlu1 %v22_v2, %s37_s8  ;;  %v16_v4 = vld [vmem:[#allocation1 + $0x2] sm:$0x1]   ;;  %8 = vst.msk [vmem:[#allocation0] sm:$0x1] %vm7_vm0, %v6_v3  }
   0xe   :  { %17 = vrot.lane.b32.xlu0 %v16_v4, %s38_s9 }
  0x7c   :  { %v12_v5 = vpop.permute.xlu0 %11   ;;  %v24_v6 = vpop.permute.xlu1 %23  }
  0x7d   :  { %14 = vst.msk [vmem:[#allocation0] sm:$0x1] %vm13_vm1, %v12_v5  }
  0x80   :  { %v18_v7 = vpop.permute.xlu0 %17  }
  0x81   :  { %20 = vst.msk [vmem:[#allocation0] sm:$0x1] %vm19_vm2, %v18_v7  }
  0x82   :  { %26 = vst.msk [vmem:[#allocation0] sm:$0x1] %vm25_vm3, %v24_v6  }
  0x89   :  { %v30_v8 = vld [vmem:[#allocation0] sm:$0x1] }
  0x8a   :  { %32 = vst [vmem:[%s56_s1] sm:$0x1] %v30_v8 }

// kernel: norm_linear_attention.4
= control target key start
LH: loop header
LB: loop body
LE: loop exit
PB: predicated region body
PF: predicated region fallthrough
CT: control target
= control target key end

     0   :  { %8 = vsyncpa [#allocation4], 0  ;;  %s433_s0 = inlined_call_operand.hbm [shape: f32[16,64], index: 0, kind: input, shape index: {}]   ;;  %s434_s1 = inlined_call_operand.hbm [shape: f32[64,256], index: 1, kind: input, shape index: {}]   ;;  %s435_s2 = inlined_call_operand.hbm [shape: f32[1,256], index: 2, kind: input, shape index: {}]   ;;  %s436_s3 = inlined_call_operand.hbm [shape: f32[16,256], index: 3, kind: output, shape index: {}]  }
   0x1   :  { %9 = vsyncpa [#allocation7], 0 }
   0x2   :  { %10 = vsyncpa [#allocation5], 0  ;;  %s350_s12 = smov [#allocation6]   ;;  %s256_s16 = scalar_lea.hbm %s434_s1, 2048 }
   0x3   :  { %s28_s13 = sshll.u32 %s350_s12, 4  ;;  %p257_p0 = scmp.ne.s32.totalorder %s434_s1, %s256_s16  ;;  %s29_s13 = int_to_ptr.vmem [resolvable:$true] %s28_s13 }
   0x4   :  { %p260_p1 = scmp.lt.u32.totalorder %s256_s16, %s434_s1 }
   0x6   :  { %p262_p2 = pnand %p260_p1, %p257_p0 }
   0x8   :  { %265 = shalt.err (!%p262_p2)
}
   0x9   :  { %s266_s21 = scalar_lea.vmem %s29_s13, 2048  ;;  %p271_p4 = scmp.lt.s32.totalorder %s29_s13, %s29_s13 }
   0xa   :  { %p267_p3 = scmp.ne.s32.totalorder %s29_s13, %s266_s21  ;;  %p272_p5 = scmp.lt.s32.totalorder %s266_s21, %s266_s21 }
   0xc   :  { %p273_p6 = por %p272_p5, %p271_p4 }
   0xe   :  { %p274_p7 = pnand %p273_p6, %p267_p3 }
  0x10   :  { %277 = shalt.err (!%p274_p7)
}
  0x11   :  { %s351_s22 = smov 256   ;;  %s352_s23 = smov 16  }
  0x12   :  { %34 = dma.hbm_to_vmem [thread:$0]  %s434_s1, 2048, %s29_s13, [#allocation7], %s351_s22, %s351_s22, %s352_s23  }
  0x13   :  { %s353_s26 = smov [#allocation3]   ;;  %s278_s30 = scalar_lea.hbm %s433_s0, 256 }
  0x14   :  { %s16_s27 = sshll.u32 %s353_s26, 4  ;;  %p279_p8 = scmp.ne.s32.totalorder %s433_s0, %s278_s30  ;;  %s17_s27 = int_to_ptr.vmem [resolvable:$true] %s16_s27 }
  0x15   :  { %p282_p9 = scmp.lt.u32.totalorder %s278_s30, %s433_s0 }
  0x17   :  { %p284_p10 = pnand %p282_p9, %p279_p8 }
  0x19   :  { %287 = shalt.err (!%p284_p10)
}
  0x1a   :  { %s288_s8 = scalar_lea.vmem %s17_s27, 256  ;;  %p293_p12 = scmp.lt.s32.totalorder %s17_s27, %s17_s27 }
  0x1b   :  { %p289_p11 = scmp.ne.s32.totalorder %s17_s27, %s288_s8  ;;  %p294_p13 = scmp.lt.s32.totalorder %s288_s8, %s288_s8 }
  0x1d   :  { %p295_p0 = por %p294_p13, %p293_p12 }
  0x1f   :  { %p296_p1 = pnand %p295_p0, %p289_p11 }
  0x21   :  { %299 = shalt.err (!%p296_p1)
}
  0x22   :  { %s354_s1 = smov 128   ;;  %s355_s9 = smov 8  }
  0x23   :  { %22 = dma.hbm_to_vmem [thread:$0]  %s433_s0, 256, %s17_s27, [#allocation4], %s354_s1, %s354_s1, %s355_s9  }
  0x24   :  { %s356_s12 = smov [#allocation8]   ;;  %s300_s16 = scalar_lea.hbm %s435_s2, 32 }
  0x25   :  { %s41_s13 = sshll.u32 %s356_s12, 4  ;;  %p301_p2 = scmp.ne.s32.totalorder %s435_s2, %s300_s16  ;;  %s42_s13 = int_to_ptr.vmem [resolvable:$true] %s41_s13 }
  0x26   :  { %p304_p3 = scmp.lt.u32.totalorder %s300_s16, %s435_s2 }
  0x28   :  { %p306_p4 = pnand %p304_p3, %p301_p2 }
  0x2a   :  { %309 = shalt.err (!%p306_p4)
}
  0x2b   :  { %s310_s21 = scalar_lea.vmem %s42_s13, 32  ;;  %p315_p6 = scmp.lt.s32.totalorder %s42_s13, %s42_s13 }
  0x2c   :  { %p311_p5 = scmp.ne.s32.totalorder %s42_s13, %s310_s21  ;;  %p316_p7 = scmp.lt.s32.totalorder %s310_s21, %s310_s21 }
  0x2e   :  { %p317_p8 = por %p316_p7, %p315_p6 }
  0x30   :  { %p318_p9 = pnand %p317_p8, %p311_p5 }
  0x32   :  { %321 = shalt.err (!%p318_p9)
}
  0x33   :  { %44 = dma.hbm_to_vmem [thread:$0]  %s435_s2, 32, %s42_s13, [#allocation7]  }
  0x34   :  { %344 = dma.done.wait [#allocation4], 256  }
  0x35   :  { %345 = vsyncadd [#allocation4], 4294967040 }
  0x36   :  { %346 = dma.done.wait [#allocation7], 2080  }
  0x37   :  { %347 = vsyncadd [#allocation7], 4294965216  ;;  %v357_v0 = vmov 0.0   ;;  %v69_v1 = vld [vmem:[#allocation6 + $0x8] sm:$0xff]  ;;  %v71_v2 = vld [vmem:[#allocation6 + $0x18] sm:$0xff]  ;;  %vm84_vm0 = vcmask 523264   ;;  %v185_v27 = vlaneseq }
  0x38   :  { %155 = vmatprep.mubr.f32.mxu0 %v357_v0  ;;  %161 = vmatprep.mubr.f32.mxu1 %v357_v0  ;;  %v68_v3 = vld [vmem:[#allocation6] sm:$0xff]  ;;  %v223_v4 = vpack.c.bf16 %v71_v2, %v69_v1  ;;  %v70_v5 = vld [vmem:[#allocation6 + $0x10] sm:$0xff]  ;;  %v73_v6 = vld [vmem:[#allocation6 + $0x28] sm:$0xff]  ;;  %s358_s2 = smov [#allocation9]  }
  0x39   :  { %v75_v7 = vld [vmem:[#allocation6 + $0x38] sm:$0xff]  ;;  %v225_v8 = vpack.c.bf16 %v70_v5, %v68_v3  ;;  %v72_v10 = vld [vmem:[#allocation6 + $0x20] sm:$0xff]  ;;  %v74_v11 = vld [vmem:[#allocation6 + $0x30] sm:$0xff]  ;;  %v186_v28 = vshrl.u32 %v185_v27, 7  ;;  %s208_s25 = sshll.u32 %s358_s2, 4  ;;  %s209_s25 = int_to_ptr.vmem [resolvable:$true] %s208_s25 }
  0x3a   :  { %v227_v9 = vpack.c.bf16 %v75_v7, %v73_v6  ;;  %v77_v12 = vld [vmem:[#allocation6 + $0x48] sm:$0xff]  ;;  %224 = vmatprep.subr.bf16.mxu0 %v223_v4  ;;  %239 = vmatprep.subr.bf16.mxu1 %v223_v4  ;;  %v79_v13 = vld [vmem:[#allocation6 + $0x58] sm:$0xff]  ;;  %v229_v14 = vpack.c.bf16 %v74_v11, %v72_v10  ;;  %v76_v16 = vld [vmem:[#allocation6 + $0x40] sm:$0xff]  ;;  %s322_s26 = scalar_lea.vmem %s209_s25, 512  ;;  %p327_p11 = scmp.lt.s32.totalorder %s209_s25, %s209_s25 }
  0x3b   :  { %226 = vmatpush1.bf16.msra.mxu0 %v225_v8  ;;  %243 = vmatpush1.bf16.msra.mxu1 %v225_v8  ;;  %v231_v15 = vpack.c.bf16 %v79_v13, %v77_v12  ;;  %v78_v17 = vld [vmem:[#allocation6 + $0x50] sm:$0xff]  ;;  %v81_v18 = vld [vmem:[#allocation6 + $0x68] sm:$0xff]  ;;  %v83_v19 = vld [vmem:[#allocation6 + $0x78] sm:$0xff]  ;;  %v187_v29 = vsub.s32 0, %v186_v28  ;;  %v191_v31 = vsub.s32 1, %v186_v28  ;;  %p323_p10 = scmp.ne.s32.totalorder %s209_s25, %s322_s26  ;;  %p328_p12 = scmp.lt.s32.totalorder %s322_s26, %s322_s26 }
  0x3c   :  { %228 = vmatprep.subr.bf16.mxu0 %v227_v9  ;;  %240 = vmatprep.subr.bf16.mxu1 %v227_v9  ;;  %v233_v20 = vpack.c.bf16 %v78_v17, %v76_v16  ;;  %v235_v21 = vpack.c.bf16 %v83_v19, %v81_v18  ;;  %v80_v22 = vld [vmem:[#allocation6 + $0x60] sm:$0xff]  ;;  %v82_v23 = vld [vmem:[#allocation6 + $0x70] sm:$0xff]  ;;  %v67_v26 = vld [vmem:[#allocation3 + $0x8] sm:$0xff] }
  0x3d   :  { %v237_v24 = vpack.c.bf16 %v82_v23, %v80_v22  ;;  %v66_v25 = vld [vmem:[#allocation3] sm:$0xff]  ;;  %v183_v30 = vld [vmem:[#allocation8] sm:$0x3]  ;;  %p329_p13 = por %p328_p12, %p327_p11 }
  0x3e   :  { %v188_v32 = vrot.slane %v183_v30, %v187_v29  ;;  %v192_v33 = vrot.slane %v183_v30, %v191_v31 }
  0x3f   :  { %230 = vmatpush1.bf16.msra.mxu0 %v229_v14  ;;  %244 = vmatpush1.bf16.msra.mxu1 %v229_v14  ;;  %p330_p0 = pnand %p329_p13, %p323_p10 }
  0x40   :  { %232 = vmatprep.subr.bf16.mxu0 %v231_v15  ;;  %241 = vmatprep.subr.bf16.mxu1 %v231_v15 }
  0x43   :  { %234 = vmatpush1.bf16.msra.mxu0 %v233_v20  ;;  %245 = vmatpush1.bf16.msra.mxu1 %v233_v20 }
  0x44   :  { %236 = vmatprep.subr.bf16.mxu0 %v235_v21  ;;  %242 = vmatprep.subr.bf16.mxu1 %v235_v21 }
  0x47   :  { %238 = vmatpush1.bf16.msra.mxu0 %v237_v24  ;;  %246 = vmatpush1.bf16.msra.mxu1 %v237_v24 }
  0x4a   :  { %221 = vmatmul.mubr.msk.f32.vlgmr.msra.gmra.mrb[0].mxu0 %vm84_vm0, %v66_v25  ;;  %222 = vmatmul.mubr.msk.f32.vlgmr.msra.gmra.mrb[0].mxu1 %vm84_vm0, %v67_v26 }
 0x11d   :  { %v157_v34 = vpop.f32.mrb[0].mxu0  ;;  %v163_v35 = vpop.f32.mrb[0].mxu1 }
 0x11e   :  { %v195_v36 = vadd.f32 %v188_v32, %v157_v34  ;;  %v197_v37 = vadd.f32 %v188_v32, %v163_v35  ;;  %v159_v38 = vpop.f32.mrb[1].mxu0  ;;  %v165_v39 = vpop.f32.mrb[1].mxu1 }
 0x11f   :  { %v196_v40 = vadd.f32 %v192_v33, %v159_v38  ;;  %v198_v41 = vadd.f32 %v192_v33, %v165_v39 }
 0x120   :  { %199 = vst [vmem:[#allocation9] sm:$0xff] %v195_v36  ;;  %201 = vst [vmem:[#allocation9 + $0x10] sm:$0xff] %v197_v37 }
 0x121   :  { %200 = vst [vmem:[#allocation9 + $0x8] sm:$0xff] %v196_v40  ;;  %202 = vst [vmem:[#allocation9 + $0x18] sm:$0xff] %v198_v41 }
 0x122   :  { %333 = shalt.err (!%p330_p0)
}
 0x123   :  { %s334_s29 = scalar_lea.hbm %s436_s3, 512 }
 0x124   :  { %p335_p1 = scmp.ne.s32.totalorder %s436_s3, %s334_s29  ;;  %p338_p2 = scmp.lt.u32.totalorder %s334_s29, %s436_s3 }
 0x126   :  { %p340_p3 = pnand %p338_p2, %p335_p1 }
 0x128   :  { %343 = shalt.err (!%p340_p3)
}
 0x129   :  { %214 = dma.vmem_to_hbm [thread:$0]  %s209_s25, 512, %s436_s3, [#allocation5], %s351_s22, %s351_s22, %s352_s23  }
 0x12a   :  { %348 = dma.done.wait [#allocation5], 512  }
 0x12b   :  { %349 = vsyncadd [#allocation5], 4294966784 }
 0x12c   :  { %218 = vsyncpa [#allocation4], 1 }
 0x12d   :  { %219 = vsyncpa [#allocation7], 1 }
 0x12e   :  { %220 = vsyncpa [#allocation5], 1 }

// kernel: norm_linear_attention.6
= control target key start
LH: loop header
LB: loop body
LE: loop exit
PB: predicated region body
PF: predicated region fallthrough
CT: control target
= control target key end

     0   :  { %s1583_s0 = inlined_call_operand.hbm [shape: f32[2,8,64], index: 0, kind: input, shape index: {}]   ;;  %s1584_s1 = inlined_call_operand.hbm [shape: f32[8,64], index: 1, kind: input, shape index: {}]   ;;  %s1585_s2 = inlined_call_operand.hbm [shape: f32[8,64], index: 2, kind: input, shape index: {}]   ;;  %s1586_s3 = inlined_call_operand.hbm [shape: f32[2,1,64,64], index: 3, kind: input, shape index: {}]   ;;  %s1587_s4 = inlined_call_operand.hbm [shape: f32[2,1,64,64], index: 4, kind: input, shape index: {}]   ;;  %s1588_s5 = inlined_call_operand.hbm [shape: f32[2,8,64], index: 5, kind: output, shape index: {}]  }
   0x1   :  { %1611 = sst [smem:[#allocation24_spill]] %s1584_s1 }
   0x2   :  { %1612 = sst [smem:[#allocation25_spill]] %s1586_s3 }
   0x3   :  { %1613 = sst [smem:[#allocation26_spill]] %s1588_s5 }
   0x4   :  { %10 = vsyncpa [#allocation3], 0 }
   0x5   :  { %12 = vsyncpa [#allocation3 + $0x1], 0 }
   0x6   :  { %13 = vsyncpa [#allocation6], 0 }
   0x7   :  { %14 = vsyncpa [#allocation9], 0 }
   0x8   :  { %16 = vsyncpa [#allocation9 + $0x1], 0 }
   0x9   :  { %17 = vsyncpa [#allocation4], 0 }
   0xa   :  { %19 = vsyncpa [#allocation4 + $0x1], 0  ;;  %s1241_s18 = smov 0   ;;  %s1243_s19 = smov 0  }
   0xb   :  { %s1245_s20 = smov 0   ;;  %s1247_s21 = smov 0  }
   0xc   :  { %s1249_s22 = smov 0   ;;  %s1251_s23 = smov 0  }
   0xd LB: > { %1614 = sst [smem:[#allocation16_spill]] %s1178_s18  ;;  %s1272_s24 = sadd.s32 4294967295, %s1198_s23   ;;  %s1198_s23 = sphi %s1251_s23, %s25_s23   ;;  %s1194_s22 = sphi %s1249_s22, %s1662_s22   ;;  %s1190_s21 = sphi %s1247_s21, %s1661_s21   ;;  %s1186_s20 = sphi %s1245_s20, %s1657_s20   ;;  %s1182_s19 = sphi %s1243_s19, %s1660_s19   ;;  %s1178_s18 = sphi %s1241_s18, %s1659_s18  }
   0xe   : > { %1615 = sst [smem:[#allocation17_spill]] %s1186_s20  ;;  %s751_s25 = sadd.s32 4294967294, %s1198_s23  }
   0xf   : > { %1616 = sst [smem:[#allocation18_spill]] %s1190_s21  ;;  %p62_p0 = scmp.ne.s32.totalorder %s1186_s20, %s1182_s19 }
  0x10   : > { %1617 = sst [smem:[#allocation19_spill]] %s1198_s23  ;;  %p63_p1 = scmp.eq.s32.totalorder %s1198_s23, 0 }
  0x11   : > { %p68_p2 = scmp.ne.s32.totalorder %s1182_s19, %s1178_s18  ;;  %p1589_p3 = scmp.eq.s32.totalorder %s1272_s24, 0 }
  0x12   : > { %p208_p4 = scmp.eq.s32.totalorder %s1272_s24, 1  ;;  %p1283_p5 = por %p63_p1, %p62_p0 }
  0x13   : > { %p214_p6 = scmp.eq.s32.totalorder %s751_s25, 1  ;;  %p1289_p7 = por %p1589_p3, %p68_p2 }
  0x14   : > { %p1293_p8 = por %p208_p4, %p62_p0  ;;  %p752_p10 = scmp.ge.s32.totalorder %s1198_s23, 1 }
  0x15   : > { %s1619_s28 = scalar_select %p1289_p7, 1, 0 }
  0x16   : > { %s1620_s29 = scalar_select %p1293_p8, 1, 0 }
  0x17   : > { %p1297_p9 = por %p214_p6, %p68_p2  ;;  %p221_p11 = scmp.lt.s32.totalorder %s1198_s23, 3 }
  0x18   : > { %1621 = sst [smem:[#allocation20_spill]] %s1620_s29  ;;  %s1200_s7 = smov [#allocation5]  }
  0x19   : > { %s1622_s30 = scalar_select %p1297_p9, 1, 0 }
  0x1a   : > { %p1304_p13 = pnand %p752_p10, %p221_p11  ;;  %s237_s8 = sshll.u32 %s1200_s7, 4  ;;  %s238_s8 = int_to_ptr.vmem [resolvable:$true] %s237_s8 }
  0x1b   : > { %1623 = sst [smem:[#allocation21_spill]] %s1622_s30  ;;  %p899_p1 = scmp.lt.s32.totalorder %s1198_s23, 2 }
  0x1c   : > { %s1624_s6 = scalar_select %p1304_p13, 1, 0 }
  0x1d   : > { %p876_p0 = pneg %p1304_p13  ;;  %p1313_p4 = pnand %p899_p1, %p1283_p5 }
  0x1e   : > { %s44_s11 = sadd.s32 1, %s1194_s22  ;;  %s1329_s13 = sand.u32 1, %s1186_s20  }
  0x1f   : > { %s1625_s9 = scalar_select %p1313_p4, 1, 0 }
  0x20   : > { %p1319_p2 = pnand %p876_p0, %p1589_p3  ;;  %p1324_p6 = scmp.ge.s32.totalorder %s44_s11, 2 }
  0x21   : > { %s1628_s1 = sld [smem:[#allocation24_spill]] }
  0x22   : > { %s1626_s10 = scalar_select %p1319_p2, 1, 0 }
  0x23   : > { %s1627_s12 = scalar_select %p1324_p6, 1, 0 }
  0x24   : > { %p1598_p10 = pneg %p1319_p2 }
  0x27   : > { %s962_s16 = scalar_lea.hbm %s1628_s1, 128 }
  0x28   : > { %p963_p5 = scmp.ne.s32.totalorder %s1628_s1, %s962_s16  ;;  %p969_p0 = scmp.lt.u32.totalorder %s962_s16, %s1628_s1 }
  0x2a   : > { %p965_p11 = pnand %p1598_p10, %p963_p5 }
  0x2c   : > { %p966_p1 = pneg %p965_p11 }
  0x2e   : > { %p971_p12 = pnand %p969_p0, %p966_p1 }
  0x30   : > { %974 = shalt.err (!%p971_p12)
}
  0x31   : > { %s975_s26 = scalar_lea.vmem %s238_s8, 128  ;;  %p983_p7 = scmp.lt.s32.totalorder %s238_s8, %s238_s8 }
  0x32   : > { %p976_p3 = scmp.ne.s32.totalorder %s238_s8, %s975_s26  ;;  %p984_p13 = scmp.lt.s32.totalorder %s975_s26, %s975_s26 }
  0x34   : > { %p978_p9 = pnand %p976_p3, %p1598_p10  ;;  %p985_p4 = por %p984_p13, %p983_p7 }
  0x36   : > { %p979_p8 = pneg %p978_p9 }
  0x38   : > { %p986_p6 = pnand %p985_p4, %p979_p8 }
  0x3a   : > { %989 = shalt.err (!%p986_p6)
}
  0x3b   : > { %879 = dma.hbm_to_vmem [thread:$0]  (!%p1319_p2), %s1628_s1, 128, %s238_s8, [#allocation6]  }
  0x3c   : > { %p1629_p3 = scmp.ne.s32.totalorder %s1627_s12, 0  ;;  %s282_s26 = sand.u32 1, %s1198_s23  }
  0x3d   : > { %s1596_s16 = sshll.u32 %s1329_s13, 6  ;;  %s1597_s25 = sshll.u32 %s1194_s22, 10 }
  0x3e   : > { %s1664_s11 = smov (%p1629_p3, %s44_s11), 0  ;;  %s286_s27 = scalar_lea.vmem [#allocation8], %s1596_s16 }
  0x3f   : > { %1630 = sst [smem:[#allocation22_spill]] %s1664_s11  ;;  %s48_s17 = ssub.s32 %s1194_s22, %s1664_s11 }
  0x40   : > { %p53_p7 = scmp.eq.s32.totalorder %s48_s17, 0  ;;  %s295_s7 = sshll.u32 %s286_s27, 4  ;;  %s1376_s7 = int_to_ptr.vmem [resolvable:$true] %s295_s7 }
  0x41   : > { %s1631_s14 = sadd.s32 1, %s1186_s20  ;;  %s1633_s3 = sld [smem:[#allocation25_spill]] }
  0x42   : > { %s1367_s15 = scalar_select %p53_p7, %s1186_s20, %s1631_s14  }
  0x43   : > { %s1378_s12 = scalar_lea.sflag [#allocation9], %s282_s26  ;;  %p1634_p9 = scmp.ne.s32.totalorder %s1625_s9, 0 }
  0x44   : > { %1632 = sst [smem:[#allocation23_spill]] %s1367_s15 }
  0x45   : > { %p1384_p12 = pneg %p1634_p9 }
  0x47   : > { %s1374_s8 = scalar_lea.hbm %s1633_s3, %s1597_s25  ;;  %s995_s14 = scalar_lea.hbm %s1633_s3, 2048 }
  0x48   : > { %s990_s17 = scalar_lea.hbm %s1374_s8, 1024  ;;  %p996_p6 = scmp.lt.u32.totalorder %s1374_s8, %s1633_s3 }
  0x49   : > { %p991_p8 = scmp.ne.s32.totalorder %s1374_s8, %s990_s17  ;;  %p997_p5 = scmp.lt.u32.totalorder %s995_s14, %s990_s17 }
  0x4a   : > { %s1635_s27 = scalar_select %p1384_p12, 1, 0 }
  0x4b   : > { %p993_p13 = pnand %p1384_p12, %p991_p8  ;;  %p998_p11 = por %p997_p5, %p996_p6 }
  0x4c   : > { %p999_p1 = scmp.lt.u32.totalorder %s990_s17, %s1374_s8 }
  0x4d   : > { %p994_p4 = pneg %p993_p13 }
  0x4e   : > { %p1000_p0 = por %p999_p1, %p998_p11 }
  0x50   : > { %p1001_p3 = pnand %p1000_p0, %p994_p4 }
  0x52   : > { %1004 = shalt.err (!%p1001_p3)
}
  0x53   : > { %s1005_s26 = scalar_lea.vmem %s1376_s7, 1024  ;;  %s1201_s18 = smov [#allocation8]  }
  0x54   : > { %p1006_p7 = scmp.ne.s32.totalorder %s1376_s7, %s1005_s26  ;;  %s1010_s30 = sshll.u32 %s1201_s18, 4  ;;  %s1011_s30 = int_to_ptr.vmem [resolvable:$false] %s1010_s30 }
  0x55   : > { %s1012_s16 = scalar_lea.vmem %s1011_s30, 2048  ;;  %p1013_p10 = scmp.lt.s32.totalorder %s1376_s7, %s1011_s30 }
  0x56   : > { %p1008_p8 = pnand %p1006_p7, %p1384_p12  ;;  %p1014_p2 = scmp.lt.s32.totalorder %s1012_s16, %s1005_s26 }
  0x58   : > { %p1009_p13 = pneg %p1008_p8  ;;  %p1015_p6 = por %p1014_p2, %p1013_p10 }
  0x5a   : > { %p1016_p5 = pnand %p1015_p6, %p1009_p13 }
  0x5c   : > { %1019 = shalt.err (!%p1016_p5)
}
  0x5d   : > { %s1202_s25 = smov 128   ;;  %s1203_s17 = smov 8  }
  0x5e   : > { %889 = dma.hbm_to_vmem [thread:$0]  (!%p1634_p9), %s1374_s8, 1024, %s1376_s7, %s1378_s12, %s1202_s25, %s1202_s25, %s1203_s17  }
  0x5f   : > { %s1636_s14 = sshll.u32 %s1194_s22, 10  ;;  %s1637_s16 = sshll.u32 %s1329_s13, 6 }
  0x60   : > { %s1416_s30 = scalar_lea.hbm %s1587_s4, %s1636_s14  ;;  %s309_s1 = scalar_lea.vmem [#allocation10], %s1637_s16 }
  0x61   : > { %s318_s3 = sshll.u32 %s309_s1, 4  ;;  %s1204_s11 = smov [#allocation7]   ;;  %s1447_s3 = int_to_ptr.vmem [resolvable:$true] %s318_s3 }
  0x62   : > { %s251_s15 = sshll.u32 %s1204_s11, 4  ;;  %s1020_s5 = scalar_lea.hbm %s1585_s2, 128  ;;  %s252_s15 = int_to_ptr.vmem [resolvable:$true] %s251_s15 }
  0x63   : > { %p1021_p2 = scmp.ne.s32.totalorder %s1585_s2, %s1020_s5  ;;  %p1638_p10 = scmp.ne.s32.totalorder %s1626_s10, 0 }
  0x64   : > { %p1027_p0 = scmp.lt.u32.totalorder %s1020_s5, %s1585_s2 }
  0x65   : > { %p1639_p4 = pneg %p1638_p10 }
  0x67   : > { %p1023_p11 = pnand %p1021_p2, %p1639_p4 }
  0x69   : > { %p1024_p1 = pneg %p1023_p11 }
  0x6b   : > { %p1029_p3 = pnand %p1027_p0, %p1024_p1 }
  0x6d   : > { %1032 = shalt.err (!%p1029_p3)
}
  0x6e   : > { %s1033_s1 = scalar_lea.vmem %s252_s15, 128  ;;  %p1640_p8 = pmov %p1639_p4 }
  0x6f   : > { %p1034_p7 = scmp.ne.s32.totalorder %s252_s15, %s1033_s1  ;;  %p1041_p5 = scmp.lt.s32.totalorder %s252_s15, %s252_s15 }
  0x70   : > { %p1042_p9 = scmp.lt.s32.totalorder %s1033_s1, %s1033_s1 }
  0x71   : > { %p1036_p13 = pnand %p1034_p7, %p1640_p8 }
  0x72   : > { %p1043_p12 = por %p1042_p9, %p1041_p5 }
  0x73   : > { %p1037_p6 = pneg %p1036_p13 }
  0x75   : > { %p1044_p2 = pnand %p1043_p12, %p1037_p6 }
  0x77   : > { %1047 = shalt.err (!%p1044_p2)
}
  0x78   : > { %882 = dma.hbm_to_vmem [thread:$0]  (!%p1638_p10), %s1585_s2, 128, %s252_s15, [#allocation6]  }
  0x79   : > { %s756_s5 = sshll.u32 %s1329_s13, 3  ;;  %s757_s23 = sshll.u32 %s1194_s22, 7 }
  0x7a   : > { %s1445_s14 = scalar_lea.hbm %s1583_s0, %s757_s23  ;;  %s266_s10 = scalar_lea.vmem [#allocation2], %s756_s5 }
  0x7b   : > { %s275_s18 = sshll.u32 %s266_s10, 4  ;;  %s263_s26 = scalar_lea.sflag [#allocation3], %s1329_s13  ;;  %s276_s18 = int_to_ptr.vmem [resolvable:$true] %s275_s18 }
  0x7c   : > { %s1048_s16 = scalar_lea.hbm %s1445_s14, 128  ;;  %p1641_p12 = scmp.ne.s32.totalorder %s1635_s27, 0 }
  0x7d   : > { %p1049_p9 = scmp.ne.s32.totalorder %s1445_s14, %s1048_s16  ;;  %s1053_s8 = scalar_lea.hbm %s1583_s0, 256 }
  0x7e   : > { %p1054_p11 = scmp.lt.u32.totalorder %s1445_s14, %s1583_s0  ;;  %p1055_p1 = scmp.lt.u32.totalorder %s1053_s8, %s1048_s16 }
  0x7f   : > { %p1051_p10 = pnand %p1049_p9, %p1641_p12  ;;  %p1057_p3 = scmp.lt.u32.totalorder %s1048_s16, %s1445_s14 }
  0x80   : > { %p1056_p0 = por %p1055_p1, %p1054_p11 }
  0x81   : > { %p1052_p4 = pneg %p1051_p10 }
  0x82   : > { %p1058_p7 = por %p1057_p3, %p1056_p0 }
  0x84   : > { %p1059_p8 = pnand %p1058_p7, %p1052_p4 }
  0x86   : > { %1062 = shalt.err (!%p1059_p8)
}
  0x87   : > { %s1063_s13 = scalar_lea.vmem %s276_s18, 128  ;;  %s1205_s21 = smov [#allocation2]  }
  0x88   : > { %p1064_p13 = scmp.ne.s32.totalorder %s276_s18, %s1063_s13  ;;  %s1068_s5 = sshll.u32 %s1205_s21, 4  ;;  %s1069_s5 = int_to_ptr.vmem [resolvable:$false] %s1068_s5 }
  0x89   : > { %s1070_s23 = scalar_lea.vmem %s1069_s5, 256  ;;  %p1071_p2 = scmp.lt.s32.totalorder %s276_s18, %s1069_s5 }
  0x8a   : > { %p1066_p6 = pnand %p1064_p13, %p1641_p12  ;;  %p1072_p9 = scmp.lt.s32.totalorder %s1070_s23, %s1063_s13 }
  0x8c   : > { %p1067_p5 = pneg %p1066_p6  ;;  %p1073_p10 = por %p1072_p9, %p1071_p2 }
  0x8e   : > { %p1074_p1 = pnand %p1073_p10, %p1067_p5 }
  0x90   : > { %1077 = shalt.err (!%p1074_p1)
}
  0x91   : > { %p1642_p11 = scmp.ne.s32.totalorder %s1625_s9, 0  ;;  %s1078_s29 = scalar_lea.hbm %s1416_s30, 1024 }
  0x92   : > { %p1079_p4 = scmp.ne.s32.totalorder %s1416_s30, %s1078_s29  ;;  %s1083_s16 = scalar_lea.hbm %s1587_s4, 2048 }
  0x93   : > { %886 = dma.hbm_to_vmem [thread:$0]  (!%p1642_p11), %s1445_s14, 128, %s276_s18, %s263_s26  }
  0x94   : > { %p1081_p0 = pnand %p1079_p4, %p1641_p12  ;;  %p1084_p7 = scmp.lt.u32.totalorder %s1416_s30, %s1587_s4 }
  0x95   : > { %p1085_p8 = scmp.lt.u32.totalorder %s1083_s16, %s1078_s29  ;;  %p1087_p6 = scmp.lt.u32.totalorder %s1078_s29, %s1416_s30 }
  0x96   : > { %p1082_p3 = pneg %p1081_p0 }
  0x97   : > { %p1086_p13 = por %p1085_p8, %p1084_p7 }
  0x99   : > { %p1088_p5 = por %p1087_p6, %p1086_p13 }
  0x9b   : > { %p1089_p2 = pnand %p1088_p5, %p1082_p3 }
  0x9d   : > { %1092 = shalt.err (!%p1089_p2)
}
  0x9e   : > { %s1093_s14 = scalar_lea.vmem %s1447_s3, 1024  ;;  %s1206_s18 = smov [#allocation10]  }
  0x9f   : > { %p1094_p9 = scmp.ne.s32.totalorder %s1447_s3, %s1093_s14  ;;  %s1098_s26 = sshll.u32 %s1206_s18, 4  ;;  %s1099_s26 = int_to_ptr.vmem [resolvable:$false] %s1098_s26 }
  0xa0   : > { %s1100_s8 = scalar_lea.vmem %s1099_s26, 2048  ;;  %p1101_p4 = scmp.lt.s32.totalorder %s1447_s3, %s1099_s26 }
  0xa1   : > { %p1096_p10 = pnand %p1094_p9, %p1641_p12  ;;  %p1102_p0 = scmp.lt.s32.totalorder %s1100_s8, %s1093_s14 }
  0xa3   : > { %p1097_p1 = pneg %p1096_p10  ;;  %p1103_p7 = por %p1102_p0, %p1101_p4 }
  0xa5   : > { %p1104_p8 = pnand %p1103_p7, %p1097_p1 }
  0xa7   : > { %1107 = shalt.err (!%p1104_p8)
}
  0xa8   : > { %892 = dma.hbm_to_vmem [thread:$0]  (!%p1642_p11), %s1416_s30, 1024, %s1447_s3, %s1378_s12, %s1202_s25, %s1202_s25, %s1203_s17  }
  0xa9   : > { %p1643_p12 = scmp.ne.s32.totalorder %s1624_s6, 0 }
  0xaa   : > { %s1495_s27 = sand.u32 (!%p1643_p12), 1, %s1182_s19   ;;  %p1644_p3 = scmp.ne.s32.totalorder (!%p1643_p12), %s1619_s28, 0 }
  0xab   : > { %330 = sbr.rel (%p1643_p12) target bundleno = 451 (0x1c3), region = 40  ;;  %s765_s1 = sshll.u32 (!%p1643_p12), %s1495_s27, 3 }
  0xac   : > { %s333_s20 = scalar_lea.sflag (!%p1643_p12), [#allocation3], %s1495_s27  ;;  %s1501_s9 = scalar_lea.vmem (!%p1643_p12), [#allocation2], %s765_s1 }
  0xb2   : > { %1161 = dma.done.wait (%p1644_p3), %s333_s20, 128  }
  0xb3   : > { %1163 = vsyncadd (%p1644_p3), %s333_s20, 4294967168  ;;  %p1645_p11 = scmp.eq.s32.totalorder %s1272_s24, 0 }
  0xb5   : > { %1165 = dma.done.wait (%p1645_p11), [#allocation6], 256   ;;  %p1646_p13 = pmov %p1645_p11 }
  0xb6   : > { %s349_s3 = sand.u32 1, %s1272_s24   ;;  %s768_s6 = sshll.u32 %s1495_s27, 6 }
  0xb7   : > { %1167 = vsyncadd (%p1646_p13), [#allocation6], 4294967040  ;;  %s350_s12 = scalar_lea.sflag [#allocation9], %s349_s3  ;;  %s1513_s25 = scalar_lea.vmem [#allocation8], %s768_s6 }
  0xb8   : > { %1169 = dma.done.wait (%p1644_p3), %s350_s12, 2048  }
  0xb9   : > { %1171 = vsyncadd (%p1644_p3), %s350_s12, 4294965248  ;;  %v1207_v0 = vmov 0.0|0.0   ;;  %vm1208_vm0 = vmmov 0   ;;  %v1209_v1 = vmov 0.0   ;;  %s362_s24 = scalar_lea.vmem [#allocation10], %s768_s6  ;;  %v411_v4 = vld [vmem:[%s1513_s25] sm:$0xff] }
  0xba   : > { %835 = vmatprep.subr.bf16.mxu1 %v1207_v0  ;;  %847 = vmatprep.subr.bf16.mxu0 %v1207_v0  ;;  %v419_v2 = vld [vmem:[%s362_s24] sm:$0xff]  ;;  %v420_v3 = vld [vmem:[%s362_s24 + $0x8] sm:$0xff]  ;;  %v421_v7 = vld [vmem:[%s362_s24 + $0x10] sm:$0xff]  ;;  %s1647_s28 = sld [smem:[#allocation18_spill]]  ;;  %vm427_vm1 = vcmask 523264   ;;  %s1648_s17 = sld [smem:[#allocation20_spill]] }
  0xbb   : > { %813 = vmatprep.mubr.msk.f32.mxu1 %vm1208_vm0, %v1209_v1  ;;  %832 = vmatprep.mubr.msk.f32.mxu0 %vm1208_vm0, %v1209_v1  ;;  %v836_v5 = vpack.c.bf16 %v420_v3, %v419_v2  ;;  %v412_v6 = vld [vmem:[%s1513_s25 + $0x8] sm:$0xff]  ;;  %v422_v8 = vld [vmem:[%s362_s24 + $0x18] sm:$0xff]  ;;  %v413_v10 = vld [vmem:[%s1513_s25 + $0x10] sm:$0xff]  ;;  %s398_s13 = scalar_lea.vmem [#allocation11], %s765_s1  ;;  %s1649_s29 = sld [smem:[#allocation26_spill]] }
  0xbc   : > { %v848_v9 = vpack.c.bf16 %v412_v6, %v411_v4  ;;  %v414_v11 = vld [vmem:[%s1513_s25 + $0x18] sm:$0xff]  ;;  %v839_v12 = vpack.c.bf16 %v422_v8, %v421_v7  ;;  %v423_v14 = vld [vmem:[%s362_s24 + $0x20] sm:$0xff]  ;;  %v424_v15 = vld [vmem:[%s362_s24 + $0x28] sm:$0xff]  ;;  %s591_s21 = sshll.u32 %s398_s13, 4  ;;  %s576_s10 = scalar_lea.sflag [#allocation4], %s1495_s27  ;;  %s1536_s21 = int_to_ptr.vmem [resolvable:$true] %s591_s21 }
  0xbd   : > { %837 = vmatpush3.bf16.msra.mxu1 %v836_v5  ;;  %v851_v13 = vpack.c.bf16 %v414_v11, %v413_v10  ;;  %v415_v16 = vld [vmem:[%s1513_s25 + $0x20] sm:$0xff]  ;;  %v416_v17 = vld [vmem:[%s1513_s25 + $0x28] sm:$0xff]  ;;  %v842_v20 = vpack.c.bf16 %v424_v15, %v423_v14  ;;  %v425_v22 = vld [vmem:[%s362_s24 + $0x30] sm:$0xff]  ;;  %s1108_s16 = scalar_lea.vmem %s1536_s21, 128  ;;  %s1210_s15 = smov [#allocation11]  }
  0xbe   : > { %849 = vmatpush3.bf16.msra.mxu0 %v848_v9  ;;  %838 = vmatprep.subr.bf16.mxu1 %v1207_v0  ;;  %v399_v18 = vld [vmem:[%s1501_s9] sm:$0xff]  ;;  %v854_v21 = vpack.c.bf16 %v416_v17, %v415_v16  ;;  %v426_v23 = vld [vmem:[%s362_s24 + $0x38] sm:$0xff]  ;;  %v417_v25 = vld [vmem:[%s1513_s25 + $0x30] sm:$0xff]  ;;  %p1109_p6 = scmp.ne.s32.totalorder %s1536_s21, %s1108_s16  ;;  %s1112_s7 = sshll.u32 %s1210_s15, 4  ;;  %s1113_s7 = int_to_ptr.vmem [resolvable:$false] %s1112_s7 }
  0xbf   : > { %850 = vmatprep.subr.bf16.mxu0 %v1207_v0  ;;  %v400_v19 = vsub.f32 0.0, %v399_v18  ;;  %v418_v26 = vld [vmem:[%s1513_s25 + $0x38] sm:$0xff]  ;;  %v845_v27 = vpack.c.bf16 %v426_v23, %v425_v22  ;;  %v407_v33 = vld [vmem:[#allocation5] sm:$0xff]  ;;  %s1114_s14 = scalar_lea.vmem %s1113_s7, 256  ;;  %p1115_p10 = scmp.lt.s32.totalorder %s1536_s21, %s1113_s7 }
  0xc0   : > { %v857_v28 = vpack.c.bf16 %v418_v26, %v417_v25  ;;  %v409_v32 = vld [vmem:[#allocation7] sm:$0xff]  ;;  %s774_s30 = sshll.u32 %s1647_s28, 7  ;;  %p1650_p5 = scmp.ne.s32.totalorder %s1648_s17, 0 }
  0xc1   : > { %840 = vmatpush3.bf16.msra.mxu1 %v839_v12  ;;  %v401_v24 = vmul.f32 1.442695, %v400_v19  ;;  %s1534_s11 = scalar_lea.hbm %s1649_s29, %s774_s30  ;;  %p1116_p1 = scmp.lt.s32.totalorder %s1114_s14, %s1108_s16 }
  0xc2   : > { %852 = vmatpush3.bf16.msra.mxu0 %v851_v13  ;;  %841 = vmatprep.subr.bf16.mxu1 %v1207_v0  ;;  %p1110_p2 = pnand %p1109_p6, %p1650_p5 }
  0xc3   : > { %853 = vmatprep.subr.bf16.mxu0 %v1207_v0  ;;  %958 = vpow2.f32 %v401_v24  ;;  %p1117_p4 = por %p1116_p1, %p1115_p10 }
  0xc4   : > { %p1111_p9 = pneg %p1110_p2 }
  0xc5   : > { %843 = vmatpush3.bf16.msra.mxu1 %v842_v20 }
  0xc6   : > { %855 = vmatpush3.bf16.msra.mxu0 %v854_v21  ;;  %844 = vmatprep.subr.bf16.mxu1 %v1207_v0  ;;  %p1118_p0 = pnand %p1117_p4, %p1111_p9 }
  0xc7   : > { %856 = vmatprep.subr.bf16.mxu0 %v1207_v0 }
  0xc9   : > { %846 = vmatpush3.bf16.msra.mxu1 %v845_v27 }
  0xca   : > { %858 = vmatpush3.bf16.msra.mxu0 %v857_v28 }
  0xcd   : > { %v959_v29 = vpop.eup %958 }
  0xce   : > { %v403_v30 = vadd.f32 1.0, %v959_v29 }
  0xd0   : > { %960 = vrcp.f32 %v403_v30 }
  0xda   : > { %v961_v31 = vpop.eup %960 }
  0xdb   : > { %v406_v34 = vmul.f32 %v961_v31, %v399_v18 }
  0xdd   : > { %v410_v35 = vmul.f32 %v409_v32, %v406_v34  ;;  %v408_v36 = vmul.f32 %v407_v33, %v406_v34 }
  0xdf   : > { %814 = vmatmul.mubr.msk.f32.vlgmr.msra.gmra.mrb[0].mxu1 %vm427_vm1, %v410_v35  ;;  %833 = vmatmul.mubr.msk.f32.vlgmr.msra.gmra.mrb[0].mxu0 %vm427_vm1, %v408_v36 }
 0x1b2   : > { %v497_v37 = vpop.f32.mrb[0].mxu1  ;;  %v570_v38 = vpop.f32.mrb[0].mxu0 }
 0x1b3   : > { %v571_v39 = vadd.f32 %v570_v38, %v497_v37  ;;  %v815_v40 = vpop.f32.mrb[1].mxu1  ;;  %v834_v41 = vpop.f32.mrb[1].mxu0 }
 0x1b5   : > { %574 = vst.msk [vmem:[%s398_s13] sm:$0xff] %vm427_vm1, %v571_v39 }
 0x1b6   : > { %1121 = shalt.err (!%p1118_p0)
}
 0x1b7   : > { %s1122_s18 = scalar_lea.hbm %s1534_s11, 128  ;;  %s1126_s27 = scalar_lea.hbm %s1649_s29, 256 }
 0x1b8   : > { %p1123_p7 = scmp.ne.s32.totalorder %s1534_s11, %s1122_s18  ;;  %p1127_p3 = scmp.lt.u32.totalorder %s1534_s11, %s1649_s29 }
 0x1b9   : > { %p1128_p11 = scmp.lt.u32.totalorder %s1126_s27, %s1122_s18  ;;  %p1130_p6 = scmp.lt.u32.totalorder %s1122_s18, %s1534_s11 }
 0x1ba   : > { %p1124_p8 = pnand %p1123_p7, %p1650_p5 }
 0x1bb   : > { %p1129_p13 = por %p1128_p11, %p1127_p3 }
 0x1bc   : > { %p1125_p12 = pneg %p1124_p8 }
 0x1bd   : > { %p1131_p2 = por %p1130_p6, %p1129_p13 }
 0x1bf   : > { %p1132_p9 = pnand %p1131_p2, %p1125_p12 }
 0x1c1   : > { %1135 = shalt.err (!%p1132_p9)
}
 0x1c2   : > { %874 = dma.vmem_to_hbm [thread:$0]  (%p1650_p5), %s1536_s21, 128, %s1534_s11, %s576_s10  }
 0x1c3 PF: > { %s1651_s9 = sld [smem:[#allocation16_spill]]  ;;  %s1652_s3 = sld [smem:[#allocation21_spill]] }
 0x1c4   : > { %s1653_s6 = sld [smem:[#allocation19_spill]] }
 0x1c9   : > { %s603_s12 = sand.u32 1, %s1651_s9   ;;  %p1654_p10 = scmp.ne.s32.totalorder %s1652_s3, 0 }
 0x1ca   : > { %p1655_p1 = scmp.ge.s32.totalorder %s1653_s6, 2  ;;  %s604_s25 = scalar_lea.sflag [#allocation4], %s603_s12 }
 0x1cc   : > { %p894_p4 = pnand %p1655_p1, %p1654_p10 }
 0x1ce   : > { %1173 = dma.done.wait (!%p894_p4), %s604_s25, 128  }
 0x1cf   : > { %1175 = vsyncadd (!%p894_p4), %s604_s25, 4294967168  ;;  %s25_s23 = sadd.s32 1, %s1653_s6   ;;  %s1656_s24 = sld [smem:[#allocation17_spill]] }
 0x1d0   : > { %p22_p0 = scmp.ge.s32.totalorder %s25_s23, 4   ;;  %s1657_s20 = sld [smem:[#allocation23_spill]] }
 0x1d1   : > { %s1658_s28 = sld [smem:[#allocation22_spill]]  ;;  %s1659_s18 = smov %s1182_s19 }
 0x1d2   : > { %s1661_s21 = smov %s1194_s22  ;;  %24 = sbr.rel (!%p22_p0) target bundleno = 13 (0xd), region = 119 }
 0x1d5   : > { %s1660_s19 = smov %s1656_s24 }
 0x1d7   : > { %s1662_s22 = smov %s1658_s28 }
 0x1d9   :  { %609 = vsyncpa [#allocation3], 1 }
 0x1da   :  { %611 = vsyncpa [#allocation3 + $0x1], 1 }
 0x1db   :  { %612 = vsyncpa [#allocation6], 1 }
 0x1dc   :  { %613 = vsyncpa [#allocation9], 1 }
 0x1dd   :  { %615 = vsyncpa [#allocation9 + $0x1], 1 }
 0x1de   :  { %616 = vsyncpa [#allocation4], 1 }
 0x1df   :  { %618 = vsyncpa [#allocation4 + $0x1], 1 }

// kernel: norm_linear_attention.7
= control target key start
LH: loop header
LB: loop body
LE: loop exit
PB: predicated region body
PF: predicated region fallthrough
CT: control target
= control target key end

     0   :  { %11 = vsyncpa [#allocation4], 0  ;;  %s664_s0 = inlined_call_operand.hbm [shape: f32[16,64], index: 0, kind: input, shape index: {}]   ;;  %s665_s1 = inlined_call_operand.hbm [shape: f32[16,64], index: 1, kind: input, shape index: {}]   ;;  %s666_s2 = inlined_call_operand.hbm [shape: f32[1,64], index: 2, kind: input, shape index: {}]   ;;  %s667_s3 = inlined_call_operand.hbm [shape: f32[1,64], index: 3, kind: input, shape index: {}]   ;;  %s668_s4 = inlined_call_operand.hbm [shape: f32[64,64], index: 4, kind: input, shape index: {}]   ;;  %s669_s5 = inlined_call_operand.hbm [shape: f32[1,64], index: 5, kind: input, shape index: {}]   ;;  %s670_s6 = inlined_call_operand.hbm [shape: f32[16,64], index: 6, kind: output, shape index: {}]  }
   0x1   :  { %12 = vsyncpa [#allocation7], 0 }
   0x2   :  { %13 = vsyncpa [#allocation10], 0 }
   0x3   :  { %14 = vsyncpa [#allocation13], 0 }
   0x4   :  { %15 = vsyncpa [#allocation5], 0  ;;  %s506_s21 = smov [#allocation6]   ;;  %s507_s23 = smov [#allocation9]  }
   0x5   :  { %s33_s22 = sshll.u32 %s506_s21, 4  ;;  %s56_s24 = sshll.u32 %s507_s23, 4  ;;  %s34_s22 = int_to_ptr.vmem [resolvable:$true] %s33_s22  ;;  %s550_s24 = int_to_ptr.vmem [resolvable:$true] %s56_s24 }
   0x6   :  { %s342_s27 = scalar_lea.hbm %s665_s1, 256 }
   0x7   :  { %p343_p0 = scmp.ne.s32.totalorder %s665_s1, %s342_s27  ;;  %p346_p1 = scmp.lt.u32.totalorder %s342_s27, %s665_s1 }
   0x9   :  { %p348_p2 = pnand %p346_p1, %p343_p0 }
   0xb   :  { %351 = shalt.err (!%p348_p2)
}
   0xc   :  { %s352_s8 = scalar_lea.vmem %s34_s22, 256  ;;  %p357_p4 = scmp.lt.s32.totalorder %s34_s22, %s34_s22 }
   0xd   :  { %p353_p3 = scmp.ne.s32.totalorder %s34_s22, %s352_s8  ;;  %p358_p5 = scmp.lt.s32.totalorder %s352_s8, %s352_s8 }
   0xf   :  { %p359_p6 = por %p358_p5, %p357_p4 }
  0x11   :  { %p360_p7 = pnand %p359_p6, %p353_p3 }
  0x13   :  { %363 = shalt.err (!%p360_p7)
}
  0x14   :  { %s508_s9 = smov 128   ;;  %s509_s10 = smov 8  }
  0x15   :  { %39 = dma.hbm_to_vmem [thread:$0]  %s665_s1, 256, %s34_s22, [#allocation7], %s508_s9, %s508_s9, %s509_s10  }
  0x16   :  { %s364_s15 = scalar_lea.hbm %s667_s3, 16 }
  0x17   :  { %p365_p8 = scmp.ne.s32.totalorder %s667_s3, %s364_s15  ;;  %p368_p9 = scmp.lt.u32.totalorder %s364_s15, %s667_s3 }
  0x19   :  { %p370_p10 = pnand %p368_p9, %p365_p8 }
  0x1b   :  { %373 = shalt.err (!%p370_p10)
}
  0x1c   :  { %s374_s20 = scalar_lea.vmem %s550_s24, 16  ;;  %s378_s1 = scalar_lea.vmem %s550_s24, 32 }
  0x1d   :  { %p375_p11 = scmp.ne.s32.totalorder %s550_s24, %s374_s20  ;;  %p379_p12 = scmp.lt.s32.totalorder %s550_s24, %s550_s24 }
  0x1e   :  { %p380_p13 = scmp.lt.s32.totalorder %s378_s1, %s374_s20 }
  0x20   :  { %p381_p0 = por %p380_p13, %p379_p12 }
  0x22   :  { %p382_p1 = pnand %p381_p0, %p375_p11 }
  0x24   :  { %385 = shalt.err (!%p382_p1)
}
  0x25   :  { %59 = dma.hbm_to_vmem [thread:$0]  %s667_s3, 16, %s550_s24, [#allocation10]  }
  0x26   :  { %s510_s23 = smov [#allocation3]   ;;  %s511_s26 = smov [#allocation8]  }
  0x27   :  { %s21_s25 = sshll.u32 %s510_s23, 4  ;;  %s46_s27 = sshll.u32 %s511_s26, 4  ;;  %s22_s25 = int_to_ptr.vmem [resolvable:$true] %s21_s25  ;;  %s47_s27 = int_to_ptr.vmem [resolvable:$true] %s46_s27 }
  0x28   :  { %s386_s30 = scalar_lea.hbm %s664_s0, 256 }
  0x29   :  { %p387_p2 = scmp.ne.s32.totalorder %s664_s0, %s386_s30  ;;  %p390_p3 = scmp.lt.u32.totalorder %s386_s30, %s664_s0 }
  0x2b   :  { %p392_p4 = pnand %p390_p3, %p387_p2 }
  0x2d   :  { %395 = shalt.err (!%p392_p4)
}
  0x2e   :  { %s396_s3 = scalar_lea.vmem %s22_s25, 256  ;;  %p401_p6 = scmp.lt.s32.totalorder %s22_s25, %s22_s25 }
  0x2f   :  { %p397_p5 = scmp.ne.s32.totalorder %s22_s25, %s396_s3  ;;  %p402_p7 = scmp.lt.s32.totalorder %s396_s3, %s396_s3 }
  0x31   :  { %p403_p8 = por %p402_p7, %p401_p6 }
  0x33   :  { %p404_p9 = pnand %p403_p8, %p397_p5 }
  0x35   :  { %407 = shalt.err (!%p404_p9)
}
  0x36   :  { %27 = dma.hbm_to_vmem [thread:$0]  %s664_s0, 256, %s22_s25, [#allocation4], %s508_s9, %s508_s9, %s509_s10  }
  0x37   :  { %s408_s16 = scalar_lea.hbm %s666_s2, 16 }
  0x38   :  { %p409_p10 = scmp.ne.s32.totalorder %s666_s2, %s408_s16  ;;  %p412_p11 = scmp.lt.u32.totalorder %s408_s16, %s666_s2 }
  0x3a   :  { %p414_p12 = pnand %p412_p11, %p409_p10 }
  0x3c   :  { %417 = shalt.err (!%p414_p12)
}
  0x3d   :  { %s418_s1 = scalar_lea.vmem %s47_s27, 16  ;;  %s422_s21 = scalar_lea.vmem %s47_s27, 32 }
  0x3e   :  { %p419_p13 = scmp.ne.s32.totalorder %s47_s27, %s418_s1  ;;  %p423_p0 = scmp.lt.s32.totalorder %s47_s27, %s47_s27 }
  0x3f   :  { %p424_p1 = scmp.lt.s32.totalorder %s422_s21, %s418_s1 }
  0x41   :  { %p425_p2 = por %p424_p1, %p423_p0 }
  0x43   :  { %p426_p3 = pnand %p425_p2, %p419_p13 }
  0x45   :  { %429 = shalt.err (!%p426_p3)
}
  0x46   :  { %49 = dma.hbm_to_vmem [thread:$0]  %s666_s2, 16, %s47_s27, [#allocation7]  }
  0x47   :  { %s512_s23 = smov [#allocation11]   ;;  %s513_s26 = smov [#allocation12]  }
  0x48   :  { %s65_s25 = sshll.u32 %s512_s23, 4  ;;  %s78_s28 = sshll.u32 %s513_s26, 4  ;;  %s66_s25 = int_to_ptr.vmem [resolvable:$true] %s65_s25  ;;  %s79_s28 = int_to_ptr.vmem [resolvable:$true] %s78_s28 }
  0x49   :  { %s430_s7 = scalar_lea.hbm %s668_s4, 1024 }
  0x4a   :  { %p431_p4 = scmp.ne.s32.totalorder %s668_s4, %s430_s7  ;;  %p434_p5 = scmp.lt.u32.totalorder %s430_s7, %s668_s4 }
  0x4c   :  { %p436_p6 = pnand %p434_p5, %p431_p4 }
  0x4e   :  { %439 = shalt.err (!%p436_p6)
}
  0x4f   :  { %s440_s2 = scalar_lea.vmem %s66_s25, 1024  ;;  %p445_p8 = scmp.lt.s32.totalorder %s66_s25, %s66_s25 }
  0x50   :  { %p441_p7 = scmp.ne.s32.totalorder %s66_s25, %s440_s2  ;;  %p446_p9 = scmp.lt.s32.totalorder %s440_s2, %s440_s2 }
  0x52   :  { %p447_p10 = por %p446_p9, %p445_p8 }
  0x54   :  { %p448_p11 = pnand %p447_p10, %p441_p7 }
  0x56   :  { %451 = shalt.err (!%p448_p11)
}
  0x57   :  { %71 = dma.hbm_to_vmem [thread:$0]  %s668_s4, 1024, %s66_s25, [#allocation10], %s508_s9, %s508_s9, %s509_s10  }
  0x58   :  { %s452_s15 = scalar_lea.hbm %s669_s5, 16 }
  0x59   :  { %p453_p12 = scmp.ne.s32.totalorder %s669_s5, %s452_s15  ;;  %p456_p13 = scmp.lt.u32.totalorder %s452_s15, %s669_s5 }
  0x5b   :  { %p458_p0 = pnand %p456_p13, %p453_p12 }
  0x5d   :  { %461 = shalt.err (!%p458_p0)
}
  0x5e   :  { %s462_s20 = scalar_lea.vmem %s79_s28, 16  ;;  %s466_s1 = scalar_lea.vmem %s79_s28, 32 }
  0x5f   :  { %p463_p1 = scmp.ne.s32.totalorder %s79_s28, %s462_s20  ;;  %p467_p2 = scmp.lt.s32.totalorder %s79_s28, %s79_s28 }
  0x60   :  { %p468_p3 = scmp.lt.s32.totalorder %s466_s1, %s462_s20 }
  0x62   :  { %p469_p4 = por %p468_p3, %p467_p2 }
  0x64   :  { %p470_p5 = pnand %p469_p4, %p463_p1 }
  0x66   :  { %473 = shalt.err (!%p470_p5)
}
  0x67   :  { %81 = dma.hbm_to_vmem [thread:$0]  %s669_s5, 16, %s79_s28, [#allocation13]  }
  0x68   :  { %496 = dma.done.wait [#allocation4], 256  }
  0x69   :  { %497 = vsyncadd [#allocation4], 4294967040 }
  0x6a   :  { %498 = dma.done.wait [#allocation7], 272  }
  0x6b   :  { %499 = vsyncadd [#allocation7], 4294967024 }
  0x6c   :  { %500 = dma.done.wait [#allocation10], 1040  }
  0x6d   :  { %501 = vsyncadd [#allocation10], 4294966256 }
  0x6e   :  { %502 = dma.done.wait [#allocation13], 16  }
  0x6f   :  { %503 = vsyncadd [#allocation13], 4294967280  ;;  %vm108_vm0 = vcmask 523264   ;;  %v104_v0 = vld [vmem:[#allocation3] sm:$0xff]  ;;  %v105_v1 = vld [vmem:[#allocation3 + $0x8] sm:$0xff]  ;;  %s514_s5 = smov [#allocation14]  }
  0x70   :  { %v109_v2 = vsel %vm108_vm0, %v104_v0, 0.0  ;;  %v112_v3 = vsel %vm108_vm0, %v105_v1, 0.0  ;;  %v160_v14 = vld [vmem:[#allocation11] sm:$0xff]  ;;  %v161_v15 = vld [vmem:[#allocation11 + $0x8] sm:$0xff]  ;;  %v162_v17 = vld [vmem:[#allocation11 + $0x10] sm:$0xff]  ;;  %s264_s0 = sshll.u32 %s514_s5, 4  ;;  %s265_s0 = int_to_ptr.vmem [resolvable:$true] %s264_s0 }
  0x71   :  { %110 = vadd.xlane.f32.xlu0 %v109_v2  ;;  %v313_v16 = vpack.c.bf16 %v161_v15, %v160_v14  ;;  %v163_v18 = vld [vmem:[#allocation11 + $0x18] sm:$0xff]  ;;  %v164_v20 = vld [vmem:[#allocation11 + $0x20] sm:$0xff]  ;;  %v165_v21 = vld [vmem:[#allocation11 + $0x28] sm:$0xff]  ;;  %s474_s22 = scalar_lea.vmem %s265_s0, 256  ;;  %p479_p7 = scmp.lt.s32.totalorder %s265_s0, %s265_s0 }
  0x72   :  { %v317_v19 = vpack.c.bf16 %v163_v18, %v162_v17  ;;  %v321_v22 = vpack.c.bf16 %v165_v21, %v164_v20  ;;  %v166_v23 = vld [vmem:[#allocation11 + $0x30] sm:$0xff]  ;;  %v167_v24 = vld [vmem:[#allocation11 + $0x38] sm:$0xff]  ;;  %v281_v48 = vld [vmem:[#allocation12] ss:$0 sm:$0xff]  ;;  %p475_p6 = scmp.ne.s32.totalorder %s265_s0, %s474_s22  ;;  %p480_p8 = scmp.lt.s32.totalorder %s474_s22, %s474_s22 }
  0x73   :  { %314 = vmatprep.subr.bf16.mxu0 %v313_v16  ;;  %v325_v25 = vpack.c.bf16 %v167_v24, %v166_v23  ;;  %v279_v33 = vld [vmem:[#allocation8] ss:$0 sm:$0xff]  ;;  %v280_v35 = vld [vmem:[#allocation9] ss:$0 sm:$0xff]  ;;  %v106_v38 = vld [vmem:[#allocation6] sm:$0xff] }
  0x74   :  { %316 = vmatpush3.bf16.msra.mxu0 %v313_v16  ;;  %v107_v43 = vld [vmem:[#allocation6 + $0x8] sm:$0xff]  ;;  %p481_p9 = por %p480_p8, %p479_p7 }
  0x75   :  { %113 = vadd.xlane.f32.xlu0 %v112_v3  ;;  %318 = vmatprep.subr.bf16.mxu0 %v317_v19 }
  0x76   :  { %p482_p10 = pnand %p481_p9, %p475_p6 }
  0x78   :  { %320 = vmatpush3.bf16.msra.mxu0 %v317_v19 }
  0x79   :  { %322 = vmatprep.subr.bf16.mxu0 %v321_v22 }
  0x7c   :  { %324 = vmatpush3.bf16.msra.mxu0 %v321_v22 }
  0x7d   :  { %326 = vmatprep.subr.bf16.mxu0 %v325_v25 }
  0x80   :  { %328 = vmatpush3.bf16.msra.mxu0 %v325_v25 }
  0xfe   :  { %v111_v4 = vpop.xlane.xlu0 %110 }
  0xff   :  { %v116_v5 = vmul.f32 0.015625, %v111_v4 }
 0x101   :  { %v118_v6 = vsub.f32 %v104_v0, %v116_v5 }
 0x102   :  { %v114_v7 = vpop.xlane.xlu0 %113 }
 0x103   :  { %v117_v8 = vmul.f32 0.015625, %v114_v7  ;;  %v120_v9 = vmul.f32 %v118_v6, %v118_v6 }
 0x105   :  { %v119_v10 = vsub.f32 %v105_v1, %v117_v8  ;;  %v122_v11 = vsel %vm108_vm0, %v120_v9, 0.0 }
 0x106   :  { %123 = vadd.xlane.f32.xlu1 %v122_v11 }
 0x107   :  { %v121_v12 = vmul.f32 %v119_v10, %v119_v10 }
 0x109   :  { %v125_v13 = vsel %vm108_vm0, %v121_v12, 0.0 }
 0x10a   :  { %126 = vadd.xlane.f32.xlu1 %v125_v13 }
 0x193   :  { %v124_v26 = vpop.xlane.xlu1 %123 }
 0x194   :  { %v128_v27 = vmul.f32 0.015625, %v124_v26 }
 0x196   :  { %v130_v28 = vadd.f32 1e-05, %v128_v27 }
 0x197   :  { %v127_v29 = vpop.xlane.xlu1 %126 }
 0x198   :  { %338 = vrsqrt.f32 %v130_v28  ;;  %v129_v30 = vmul.f32 0.015625, %v127_v29 }
 0x19a   :  { %v131_v31 = vadd.f32 1e-05, %v129_v30 }
 0x19c   :  { %340 = vrsqrt.f32 %v131_v31 }
 0x1a2   :  { %v339_v32 = vpop.eup %338 }
 0x1a3   :  { %v134_v34 = vmul.f32 %v339_v32, %v118_v6 }
 0x1a5   :  { %v143_v36 = vmul.f32 %v279_v33, %v134_v34 }
 0x1a6   :  { %v341_v37 = vpop.eup %340 }
 0x1a7   :  { %v152_v39 = vadd.f32 %v280_v35, %v143_v36  ;;  %v135_v40 = vmul.f32 %v341_v37, %v119_v10 }
 0x1a9   :  { %v154_v41 = vmul.f32 %v152_v39, %v106_v38  ;;  %v144_v42 = vmul.f32 %v279_v33, %v135_v40 }
 0x1ab   :  { %156 = vst.msk [vmem:[#allocation2] sm:$0xff] %vm108_vm0, %v154_v41  ;;  %v153_v44 = vadd.f32 %v280_v35, %v144_v42 }
 0x1ad   :  { %v155_v45 = vmul.f32 %v153_v44, %v107_v43 }
 0x1af   :  { %157 = vst.msk [vmem:[#allocation2 + $0x8] sm:$0xff] %vm108_vm0, %v155_v45 }
 0x1b2   :  { %v158_v46 = vld [vmem:[#allocation2] sm:$0xff] }
 0x1b3   :  { %310 = vmatprep.mubr.msk.f32.mxu0 %vm108_vm0, %v158_v46 }
 0x1b6   :  { %v159_v47 = vld [vmem:[#allocation2 + $0x8] sm:$0xff] }
 0x1b7   :  { %311 = vmatmul.mubr.msk.f32.vlgmr.msra.gmra.mrb[0].mxu0 %vm108_vm0, %v159_v47 }
 0x28a   :  { %v312_v49 = vpop.f32.mrb[0].mxu0 }
 0x28b   :  { %v254_v50 = vadd.f32 %v312_v49, %v281_v48  ;;  %v248_v51 = vpop.f32.mrb[1].mxu0 }
 0x28c   :  { %v249_v52 = vadd.f32 %v281_v48, %v248_v51 }
 0x28d   :  { %258 = vst.msk [vmem:[#allocation14 + $0x8] sm:$0xff] %vm108_vm0, %v254_v50 }
 0x28e   :  { %257 = vst.msk [vmem:[#allocation14] sm:$0xff] %vm108_vm0, %v249_v52 }
 0x28f   :  { %485 = shalt.err (!%p482_p10)
}
 0x290   :  { %s486_s26 = scalar_lea.hbm %s670_s6, 256 }
 0x291   :  { %p487_p11 = scmp.ne.s32.totalorder %s670_s6, %s486_s26  ;;  %p490_p12 = scmp.lt.u32.totalorder %s486_s26, %s670_s6 }
 0x293   :  { %p492_p13 = pnand %p490_p12, %p487_p11 }
 0x295   :  { %495 = shalt.err (!%p492_p13)
}
 0x296   :  { %270 = dma.vmem_to_hbm [thread:$0]  %s265_s0, 256, %s670_s6, [#allocation5], %s508_s9, %s508_s9, %s509_s10  }
 0x297   :  { %504 = dma.done.wait [#allocation5], 256  }
 0x298   :  { %505 = vsyncadd [#allocation5], 4294967040 }
 0x299   :  { %274 = vsyncpa [#allocation4], 1 }
 0x29a   :  { %275 = vsyncpa [#allocation7], 1 }
 0x29b   :  { %276 = vsyncpa [#allocation10], 1 }
 0x29c   :  { %277 = vsyncpa [#allocation13], 1 }
 0x29d   :  { %278 = vsyncpa [#allocation5], 1 }

// kernel: norm_linear_attention.5
= control target key start
LH: loop header
LB: loop body
LE: loop exit
PB: predicated region body
PF: predicated region fallthrough
CT: control target
= control target key end

     0   :  { %s2160_s0 = inlined_call_operand.hbm [shape: f32[2,8,64], index: 0, kind: input, shape index: {}]   ;;  %s2161_s1 = inlined_call_operand.hbm [shape: f32[2,8,64], index: 1, kind: input, shape index: {}]   ;;  %s2162_s2 = inlined_call_operand.hbm [shape: f32[8,64], index: 2, kind: input, shape index: {}]   ;;  %s2163_s3 = inlined_call_operand.hbm [shape: f32[8,64], index: 3, kind: input, shape index: {}]   ;;  %s2164_s4 = inlined_call_operand.hbm [shape: f32[64,64], index: 4, kind: input, shape index: {}]   ;;  %s2165_s5 = inlined_call_operand.hbm [shape: f32[2,1,64,64], index: 5, kind: output, shape index: {0}]   ;;  %s2166_s6 = inlined_call_operand.hbm [shape: f32[2,1,64,64], index: 6, kind: output, shape index: {1}]  }
   0x1   :  { %2173 = sst [smem:[#allocation22_spill]] %s2162_s2 }
   0x2   :  { %2174 = sst [smem:[#allocation23_spill]] %s2163_s3 }
   0x3   :  { %2175 = sst [smem:[#allocation24_spill]] %s2164_s4 }
   0x4   :  { %12 = vsyncpa [#allocation3], 0 }
   0x5   :  { %14 = vsyncpa [#allocation3 + $0x1], 0 }
   0x6   :  { %15 = vsyncpa [#allocation6], 0 }
   0x7   :  { %17 = vsyncpa [#allocation6 + $0x1], 0 }
   0x8   :  { %18 = vsyncpa [#allocation9], 0 }
   0x9   :  { %19 = vsyncpa [#allocation4], 0 }
   0xa   :  { %21 = vsyncpa [#allocation4 + $0x1], 0 }
   0xb   :  { %22 = vsyncpa [#allocation13], 0 }
   0xc   :  { %24 = vsyncpa [#allocation13 + $0x1], 0  ;;  %s1626_s21 = smov 0   ;;  %s1628_s22 = smov 0  }
   0xd   :  { %s1630_s23 = smov 0   ;;  %s1632_s24 = smov 0  }
   0xe   :  { %s1634_s25 = smov 0   ;;  %s1636_s26 = smov 0  }
   0xf LB: > { %2176 = sst [smem:[#allocation20_spill]] %s1573_s25  ;;  %s1657_s27 = sadd.s32 4294967295, %s1577_s26   ;;  %s1577_s26 = sphi %s1636_s26, %s30_s26   ;;  %s1573_s25 = sphi %s1634_s25, %s2199_s25   ;;  %s1569_s24 = sphi %s1632_s24, %s2198_s24   ;;  %s1565_s23 = sphi %s1630_s23, %s2202_s23   ;;  %s1561_s22 = sphi %s1628_s22, %s2201_s22   ;;  %s1557_s21 = sphi %s1626_s21, %s2200_s21  }
  0x10   : > { %s1105_s28 = sadd.s32 4294967294, %s1577_s26   ;;  %p73_p0 = scmp.ne.s32.totalorder %s1561_s22, %s1557_s21 }
  0x11   : > { %p2167_p1 = scmp.eq.s32.totalorder %s1657_s27, 0  ;;  %p212_p3 = scmp.eq.s32.totalorder %s1105_s28, 1 }
  0x12   : > { %p1106_p5 = scmp.ge.s32.totalorder %s1577_s26, 1  ;;  %p247_p7 = scmp.lt.s32.totalorder %s1577_s26, 3 }
  0x13   : > { %p1666_p4 = por %p2167_p1, %p73_p0  ;;  %p1671_p6 = por %p212_p3, %p73_p0 }
  0x14   : > { %p1676_p8 = pnand %p1106_p5, %p247_p7  ;;  %s1579_s8 = smov [#allocation7]  }
  0x15   : > { %s2177_s29 = scalar_select %p1666_p4, 1, 0 }
  0x16   : > { %s2178_s30 = scalar_select %p1671_p6, 1, 0 }
  0x17   : > { %s2179_s7 = scalar_select %p1676_p8, 1, 0 }
  0x18   : > { %s263_s9 = sshll.u32 %s1579_s8, 4  ;;  %p1215_p10 = pneg %p1676_p8  ;;  %s264_s9 = int_to_ptr.vmem [resolvable:$true] %s263_s9 }
  0x19   : > { %s1580_s10 = smov [#allocation8]   ;;  %s1581_s13 = smov [#allocation10]  }
  0x1a   : > { %s277_s11 = sshll.u32 %s1580_s10, 4  ;;  %p1685_p11 = pnand %p1215_p10, %p2167_p1  ;;  %s1689_s11 = int_to_ptr.vmem [resolvable:$true] %s277_s11 }
  0x1b   : > { %s287_s14 = sshll.u32 %s1581_s13, 4  ;;  %s2181_s2 = sld [smem:[#allocation22_spill]]  ;;  %s1691_s14 = int_to_ptr.vmem [resolvable:$true] %s287_s14 }
  0x1c   : > { %p1701_p13 = pneg %p1685_p11 }
  0x21   : > { %s1307_s17 = scalar_lea.hbm %s2181_s2, 128 }
  0x22   : > { %p1308_p12 = scmp.ne.s32.totalorder %s2181_s2, %s1307_s17  ;;  %p1314_p5 = scmp.lt.u32.totalorder %s1307_s17, %s2181_s2 }
  0x24   : > { %p1310_p0 = pnand %p1701_p13, %p1308_p12 }
  0x26   : > { %p1311_p3 = pneg %p1310_p0 }
  0x28   : > { %p1316_p7 = pnand %p1314_p5, %p1311_p3 }
  0x2a   : > { %1319 = shalt.err (!%p1316_p7)
}
  0x2b   : > { %s1320_s10 = scalar_lea.vmem %s264_s9, 128  ;;  %p1328_p2 = scmp.lt.s32.totalorder %s264_s9, %s264_s9 }
  0x2c   : > { %p1321_p10 = scmp.ne.s32.totalorder %s264_s9, %s1320_s10  ;;  %p1329_p6 = scmp.lt.s32.totalorder %s1320_s10, %s1320_s10 }
  0x2e   : > { %p1323_p9 = pnand %p1321_p10, %p1701_p13  ;;  %p1330_p4 = por %p1329_p6, %p1328_p2 }
  0x30   : > { %p1324_p1 = pneg %p1323_p9 }
  0x32   : > { %p1331_p8 = pnand %p1330_p4, %p1324_p1 }
  0x34   : > { %1334 = shalt.err (!%p1331_p8)
}
  0x35   : > { %1218 = dma.hbm_to_vmem [thread:$0]  (!%p1685_p11), %s2181_s2, 128, %s264_s9, [#allocation6]  }
  0x36   : > { %s2183_s3 = sld [smem:[#allocation23_spill]] }
  0x3c   : > { %s1335_s18 = scalar_lea.hbm %s2183_s3, 128 }
  0x3d   : > { %p1336_p9 = scmp.ne.s32.totalorder %s2183_s3, %s1335_s18  ;;  %p1342_p1 = scmp.lt.u32.totalorder %s1335_s18, %s2183_s3 }
  0x3f   : > { %p1338_p12 = pnand %p1336_p9, %p1701_p13 }
  0x41   : > { %p1339_p2 = pneg %p1338_p12 }
  0x43   : > { %p1344_p4 = pnand %p1342_p1, %p1339_p2 }
  0x45   : > { %1347 = shalt.err (!%p1344_p4)
}
  0x46   : > { %s1348_s9 = scalar_lea.vmem %s1689_s11, 128  ;;  %p1356_p3 = scmp.lt.s32.totalorder %s1689_s11, %s1689_s11 }
  0x47   : > { %p1349_p6 = scmp.ne.s32.totalorder %s1689_s11, %s1348_s9  ;;  %p1357_p5 = scmp.lt.s32.totalorder %s1348_s9, %s1348_s9 }
  0x49   : > { %p1351_p8 = pnand %p1349_p6, %p1701_p13  ;;  %p1358_p7 = por %p1357_p5, %p1356_p3 }
  0x4b   : > { %p1352_p0 = pneg %p1351_p8 }
  0x4d   : > { %p1359_p10 = pnand %p1358_p7, %p1352_p0 }
  0x4f   : > { %1362 = shalt.err (!%p1359_p10)
}
  0x50   : > { %1221 = dma.hbm_to_vmem [thread:$0]  (!%p1685_p11), %s2183_s3, 128, %s1689_s11, [#allocation9]  }
  0x51   : > { %s2184_s4 = sld [smem:[#allocation24_spill]] }
  0x57   : > { %s1363_s18 = scalar_lea.hbm %s2184_s4, 1024 }
  0x58   : > { %p1364_p9 = scmp.ne.s32.totalorder %s2184_s4, %s1363_s18  ;;  %p1370_p1 = scmp.lt.u32.totalorder %s1363_s18, %s2184_s4 }
  0x5a   : > { %p1366_p12 = pnand %p1364_p9, %p1701_p13 }
  0x5c   : > { %p1367_p2 = pneg %p1366_p12 }
  0x5e   : > { %p1372_p4 = pnand %p1370_p1, %p1367_p2 }
  0x60   : > { %1375 = shalt.err (!%p1372_p4)
}
  0x61   : > { %s1376_s11 = scalar_lea.vmem %s1691_s14, 1024  ;;  %p1384_p3 = scmp.lt.s32.totalorder %s1691_s14, %s1691_s14 }
  0x62   : > { %p1377_p6 = scmp.ne.s32.totalorder %s1691_s14, %s1376_s11  ;;  %p1385_p5 = scmp.lt.s32.totalorder %s1376_s11, %s1376_s11 }
  0x64   : > { %p1379_p8 = pnand %p1377_p6, %p1701_p13  ;;  %p1386_p7 = por %p1385_p5, %p1384_p3 }
  0x66   : > { %p1380_p0 = pneg %p1379_p8 }
  0x68   : > { %p1387_p10 = pnand %p1386_p7, %p1380_p0 }
  0x6a   : > { %1390 = shalt.err (!%p1387_p10)
}
  0x6b   : > { %s1582_s9 = smov 128   ;;  %s1583_s20 = smov 8  }
  0x6c   : > { %1224 = dma.hbm_to_vmem [thread:$0]  (!%p1685_p11), %s2184_s4, 1024, %s1691_s14, [#allocation9], %s1582_s9, %s1582_s9, %s1583_s20  }
  0x6d   : > { %s60_s16 = sadd.s32 1, %s1565_s23  ;;  %s49_s17 = sadd.s32 1, %s1573_s25 }
  0x6e   : > { %p67_p13 = scmp.ne.s32.totalorder %s1565_s23, %s1561_s22  ;;  %p51_p9 = scmp.ge.s32.totalorder %s49_s17, 2 }
  0x6f   : > { %p68_p12 = scmp.eq.s32.totalorder %s1577_s26, 0  ;;  %p2185_p2 = scmp.eq.s32.totalorder %s1657_s27, 1 }
  0x70   : > { %p1242_p4 = scmp.lt.s32.totalorder %s1577_s26, 2  ;;  %s2204_s17 = smov (%p51_p9, %s49_s17), 0 }
  0x71   : > { %p1770_p1 = por %p2185_p2, %p67_p13  ;;  %2187 = sst [smem:[#allocation21_spill]] %s2204_s17 }
  0x72   : > { %p69_p6 = por %p68_p12, %p67_p13  ;;  %s301_s12 = sand.u32 1, %s1565_s23  }
  0x73   : > { %s2186_s18 = scalar_select %p1770_p1, 1, 0 }
  0x74   : > { %s53_s19 = ssub.s32 %s1573_s25, %s2204_s17  ;;  %s1780_s14 = sshll.u32 %s301_s12, 3 }
  0x75   : > { %p58_p11 = scmp.eq.s32.totalorder %s53_s19, 0  ;;  %s1112_s28 = sshll.u32 %s1573_s25, 7 }
  0x76   : > { %s1789_s9 = scalar_lea.hbm %s2160_s0, %s1112_s28  ;;  %s305_s20 = scalar_lea.vmem [#allocation2], %s1780_s14 }
  0x77   : > { %s1784_s8 = scalar_select %p58_p11, %s1565_s23, %s60_s16  }
  0x78   : > { %s314_s13 = sshll.u32 %s305_s20, 4  ;;  %p1796_p8 = pnand %p1242_p4, %p69_p6  ;;  %s1792_s13 = int_to_ptr.vmem [resolvable:$true] %s314_s13 }
  0x79   : > { %s1803_s10 = scalar_lea.hbm %s2161_s1, %s1112_s28  ;;  %s321_s11 = sand.u32 1, %s1577_s26  }
  0x7a   : > { %s302_s2 = scalar_lea.sflag [#allocation3], %s301_s12  ;;  %s1391_s3 = scalar_lea.hbm %s1789_s9, 128 }
  0x7b   : > { %p1392_p0 = scmp.ne.s32.totalorder %s1789_s9, %s1391_s3  ;;  %p1393_p3 = pneg %p1796_p8 }
  0x7c   : > { %s1396_s17 = scalar_lea.hbm %s2160_s0, 256  ;;  %p1397_p10 = scmp.lt.u32.totalorder %s1789_s9, %s2160_s0 }
  0x7d   : > { %p1394_p5 = pnand %p1393_p3, %p1392_p0  ;;  %p1398_p13 = scmp.lt.u32.totalorder %s1396_s17, %s1391_s3 }
  0x7e   : > { %p1400_p12 = scmp.lt.u32.totalorder %s1391_s3, %s1789_s9 }
  0x7f   : > { %p1395_p7 = pneg %p1394_p5  ;;  %p1399_p9 = por %p1398_p13, %p1397_p10 }
  0x81   : > { %p1401_p2 = por %p1400_p12, %p1399_p9 }
  0x83   : > { %p1402_p4 = pnand %p1401_p2, %p1395_p7 }
  0x85   : > { %1405 = shalt.err (!%p1402_p4)
}
  0x86   : > { %s1406_s12 = scalar_lea.vmem %s1792_s13, 128  ;;  %s1584_s4 = smov [#allocation2]  }
  0x87   : > { %p1407_p6 = scmp.ne.s32.totalorder %s1792_s13, %s1406_s12  ;;  %s1411_s28 = sshll.u32 %s1584_s4, 4  ;;  %s1412_s28 = int_to_ptr.vmem [resolvable:$false] %s1411_s28 }
  0x88   : > { %s1413_s25 = scalar_lea.vmem %s1412_s28, 256  ;;  %p1414_p5 = scmp.lt.s32.totalorder %s1792_s13, %s1412_s28 }
  0x89   : > { %p1409_p11 = pnand %p1407_p6, %p1393_p3  ;;  %p1415_p10 = scmp.lt.s32.totalorder %s1413_s25, %s1406_s12 }
  0x8b   : > { %p1410_p0 = pneg %p1409_p11  ;;  %p1416_p13 = por %p1415_p10, %p1414_p5 }
  0x8d   : > { %p1417_p9 = pnand %p1416_p13, %p1410_p0 }
  0x8f   : > { %1420 = shalt.err (!%p1417_p9)
}
  0x90   : > { %1228 = dma.hbm_to_vmem [thread:$0]  (!%p1796_p8), %s1789_s9, 128, %s1792_s13, %s302_s2  }
  0x91   : > { %s325_s3 = scalar_lea.vmem [#allocation5], %s1780_s14  ;;  %s322_s19 = scalar_lea.sflag [#allocation6], %s321_s11 }
  0x92   : > { %s334_s17 = sshll.u32 %s325_s3, 4  ;;  %s1421_s20 = scalar_lea.hbm %s1803_s10, 128  ;;  %s335_s17 = int_to_ptr.vmem [resolvable:$true] %s334_s17 }
  0x93   : > { %p1422_p7 = scmp.ne.s32.totalorder %s1803_s10, %s1421_s20  ;;  %s1426_s4 = scalar_lea.hbm %s2161_s1, 256 }
  0x94   : > { %p1427_p4 = scmp.lt.u32.totalorder %s1803_s10, %s2161_s1  ;;  %p1428_p6 = scmp.lt.u32.totalorder %s1426_s4, %s1421_s20 }
  0x95   : > { %p1424_p12 = pnand %p1422_p7, %p1393_p3  ;;  %p1430_p0 = scmp.lt.u32.totalorder %s1421_s20, %s1803_s10 }
  0x96   : > { %p1429_p11 = por %p1428_p6, %p1427_p4 }
  0x97   : > { %p1425_p2 = pneg %p1424_p12 }
  0x98   : > { %p1431_p5 = por %p1430_p0, %p1429_p11 }
  0x9a   : > { %p1432_p10 = pnand %p1431_p5, %p1425_p2 }
  0x9c   : > { %1435 = shalt.err (!%p1432_p10)
}
  0x9d   : > { %s1436_s2 = scalar_lea.vmem %s335_s17, 128  ;;  %s1585_s14 = smov [#allocation5]  }
  0x9e   : > { %p1437_p13 = scmp.ne.s32.totalorder %s335_s17, %s1436_s2  ;;  %s1441_s9 = sshll.u32 %s1585_s14, 4  ;;  %s1442_s9 = int_to_ptr.vmem [resolvable:$false] %s1441_s9 }
  0x9f   : > { %s1443_s13 = scalar_lea.vmem %s1442_s9, 256  ;;  %p1444_p12 = scmp.lt.s32.totalorder %s335_s17, %s1442_s9 }
  0xa0   : > { %p1439_p9 = pnand %p1437_p13, %p1393_p3  ;;  %p1445_p1 = scmp.lt.s32.totalorder %s1443_s13, %s1436_s2 }
  0xa2   : > { %p1440_p7 = pneg %p1439_p9  ;;  %p1446_p4 = por %p1445_p1, %p1444_p12 }
  0xa4   : > { %p1447_p6 = pnand %p1446_p4, %p1440_p7 }
  0xa6   : > { %1450 = shalt.err (!%p1447_p6)
}
  0xa7   : > { %1231 = dma.hbm_to_vmem [thread:$0]  (!%p1796_p8), %s1803_s10, 128, %s335_s17, %s322_s19  }
  0xa8   : > { %p2189_p2 = scmp.ne.s32.totalorder %s2179_s7, 0 }
  0xa9   : > { %s1856_s11 = sand.u32 (!%p2189_p2), 1, %s1561_s22   ;;  %p2190_p3 = scmp.ne.s32.totalorder (!%p2189_p2), %s2177_s29, 0 }
  0xaa   : > { %343 = sbr.rel (%p2189_p2) target bundleno = 648 (0x288), region = 40  ;;  %s1116_s3 = sshll.u32 (!%p2189_p2), %s1856_s11, 3 }
  0xab   : > { %s346_s20 = scalar_lea.sflag (!%p2189_p2), [#allocation3], %s1856_s11  ;;  %s349_s16 = scalar_lea.vmem (!%p2189_p2), [#allocation2], %s1116_s3 }
  0xb1   : > { %1532 = dma.done.wait (%p2190_p3), %s346_s20, 128  }
  0xb2   : > { %1534 = vsyncadd (%p2190_p3), %s346_s20, 4294967168  ;;  %s354_s15 = sand.u32 1, %s1657_s27   ;;  %s358_s7 = scalar_lea.vmem [#allocation5], %s1116_s3 }
  0xb3   : > { %s355_s10 = scalar_lea.sflag [#allocation6], %s354_s15 }
  0xb4   : > { %1536 = dma.done.wait (%p2190_p3), %s355_s10, 128  }
  0xb5   : > { %1538 = vsyncadd (%p2190_p3), %s355_s10, 4294967168  ;;  %p2191_p1 = scmp.eq.s32.totalorder %s1657_s27, 0 }
  0xb7   : > { %1540 = dma.done.wait (%p2191_p1), [#allocation6], 128   ;;  %p2192_p8 = pmov %p2191_p1 }
  0xb8   : > { %p2193_p11 = pmov %p2191_p1 }
  0xb9   : > { %1542 = vsyncadd (%p2192_p8), [#allocation6], 4294967168 }
  0xba   : > { %1544 = dma.done.wait (%p2193_p11), [#allocation9], 1152   ;;  %p2194_p0 = pmov %p2191_p1 }
  0xbb   : > { %v430_v0 = vld [vmem:[%s349_s16] sm:$0xff]  ;;  %v438_v9 = vld [vmem:[%s358_s7] sm:$0xff]  ;;  %s1121_s27 = sshll.u32 %s1856_s11, 6  ;;  %vm413_vm0 = vcmask 523264   ;;  %v1586_v12 = vmov 0.0   ;;  %vm483_vm1 = vcmask 64512  }
  0xbc   : > { %1546 = vsyncadd (%p2194_p0), [#allocation9], 4294966144  ;;  %v431_v1 = vsub.f32 0.0, %v430_v0  ;;  %v439_v6 = vld [vmem:[#allocation7] sm:$0xff]  ;;  %1167 = vmatprep.subr.mxu0 %v438_v9  ;;  %1181 = vmatprep.subr.mxu1 %v438_v9  ;;  %v441_v10 = vld [vmem:[#allocation8] sm:$0xff]  ;;  %s1880_s29 = scalar_lea.vmem [#allocation11], %s1121_s27 }
  0xbd   : > { %1168 = vmatpush3.msra.mxu0 %v438_v9  ;;  %1182 = vmatpush3.msra.mxu1 %v438_v9  ;;  %415 = vst.msk [vmem:[%s1880_s29 + $0x8] sm:$0xff] %vm413_vm0, %v1586_v12  ;;  %414 = vst.msk [vmem:[%s1880_s29] sm:$0xff] %vm413_vm0, %v1586_v12  ;;  %s1916_s17 = scalar_lea.vmem [#allocation12], %s1121_s27  ;;  %v1942_v37 = vld [vmem:[#allocation10 + $0x8] sm:$0xff]  ;;  %v1944_v39 = vld [vmem:[#allocation10] sm:$0xff]  ;;  %s1147_s19 = sshll.u32 %s1569_s24, 10 }
  0xbe   : > { %v432_v2 = vmul.f32 1.442695, %v431_v1  ;;  %416 = vst.msk [vmem:[%s1880_s29 + $0x10] sm:$0xff] %vm413_vm0, %v1586_v12  ;;  %417 = vst.msk [vmem:[%s1880_s29 + $0x18] sm:$0xff] %vm413_vm0, %v1586_v12  ;;  %v1960_v49 = vld [vmem:[#allocation10 + $0x18] sm:$0xff]  ;;  %v1962_v51 = vld [vmem:[#allocation10 + $0x10] sm:$0xff]  ;;  %s2012_s25 = scalar_lea.hbm %s2165_s5, %s1147_s19 }
  0xbf   : > { %418 = vst.msk [vmem:[%s1880_s29 + $0x20] sm:$0xff] %vm413_vm0, %v1586_v12  ;;  %419 = vst.msk [vmem:[%s1880_s29 + $0x28] sm:$0xff] %vm413_vm0, %v1586_v12  ;;  %v1978_v61 = vld [vmem:[#allocation10 + $0x28] sm:$0xff]  ;;  %v1980_v63 = vld [vmem:[#allocation10 + $0x20] sm:$0xff]  ;;  %s903_s12 = sshll.u32 %s1880_s29, 4  ;;  %s883_s2 = scalar_lea.sflag [#allocation4], %s1856_s11  ;;  %s2014_s12 = int_to_ptr.vmem [resolvable:$true] %s903_s12 }
  0xc0   : > { %1303 = vpow2.f32 %v432_v2  ;;  %420 = vst.msk [vmem:[%s1880_s29 + $0x30] sm:$0xff] %vm413_vm0, %v1586_v12  ;;  %421 = vst.msk [vmem:[%s1880_s29 + $0x38] sm:$0xff] %vm413_vm0, %v1586_v12  ;;  %v1996_v9 = vld [vmem:[#allocation10 + $0x38] sm:$0xff]  ;;  %s1451_s14 = scalar_lea.vmem %s2014_s12, 1024  ;;  %p2195_p10 = scmp.ne.s32.totalorder %s2186_s18, 0 }
  0xc1   : > { %423 = vst.msk [vmem:[%s1916_s17 + $0x8] sm:$0xff] %vm413_vm0, %v1586_v12  ;;  %422 = vst.msk [vmem:[%s1916_s17] sm:$0xff] %vm413_vm0, %v1586_v12  ;;  %p1452_p5 = scmp.ne.s32.totalorder %s2014_s12, %s1451_s14  ;;  %s1587_s9 = smov [#allocation11]  }
  0xc2   : > { %424 = vst.msk [vmem:[%s1916_s17 + $0x10] sm:$0xff] %vm413_vm0, %v1586_v12  ;;  %425 = vst.msk [vmem:[%s1916_s17 + $0x18] sm:$0xff] %vm413_vm0, %v1586_v12  ;;  %s1455_s13 = sshll.u32 %s1587_s9, 4  ;;  %s1456_s13 = int_to_ptr.vmem [resolvable:$false] %s1455_s13 }
  0xc3   : > { %426 = vst.msk [vmem:[%s1916_s17 + $0x20] sm:$0xff] %vm413_vm0, %v1586_v12  ;;  %427 = vst.msk [vmem:[%s1916_s17 + $0x28] sm:$0xff] %vm413_vm0, %v1586_v12  ;;  %p1453_p13 = pnand %p1452_p5, %p2195_p10  ;;  %s1457_s3 = scalar_lea.vmem %s1456_s13, 2048 }
  0xc4   : > { %428 = vst.msk [vmem:[%s1916_s17 + $0x30] sm:$0xff] %vm413_vm0, %v1586_v12  ;;  %429 = vst.msk [vmem:[%s1916_s17 + $0x38] sm:$0xff] %vm413_vm0, %v1586_v12  ;;  %v444_v29 = vld [vmem:[%s1880_s29 + $0x8] sm:$0xff]  ;;  %v443_v30 = vld [vmem:[%s1880_s29] sm:$0xff]  ;;  %p1458_p7 = scmp.lt.s32.totalorder %s2014_s12, %s1456_s13  ;;  %p1459_p12 = scmp.lt.s32.totalorder %s1457_s3, %s1451_s14 }
  0xc5   : > { %v446_v35 = vld [vmem:[%s1880_s29 + $0x18] sm:$0xff]  ;;  %v445_v36 = vld [vmem:[%s1880_s29 + $0x10] sm:$0xff]  ;;  %p1454_p9 = pneg %p1453_p13 }
  0xc6   : > { %v448_v47 = vld [vmem:[%s1880_s29 + $0x28] sm:$0xff]  ;;  %v447_v48 = vld [vmem:[%s1880_s29 + $0x20] sm:$0xff]  ;;  %p1460_p4 = por %p1459_p12, %p1458_p7 }
  0xc7   : > { %v450_v59 = vld [vmem:[%s1880_s29 + $0x38] sm:$0xff]  ;;  %v449_v60 = vld [vmem:[%s1880_s29 + $0x30] sm:$0xff] }
  0xc8   : > { %p1461_p6 = pnand %p1460_p4, %p1454_p9 }
  0xca   : > { %v1304_v3 = vpop.eup %1303 }
  0xcb   : > { %v434_v4 = vadd.f32 1.0, %v1304_v3 }
  0xcd   : > { %1305 = vrcp.f32 %v434_v4 }
  0xd7   : > { %v1306_v5 = vpop.eup %1305 }
  0xd8   : > { %v437_v7 = vmul.f32 %v1306_v5, %v430_v0 }
  0xda   : > { %v440_v8 = vmul.f32 %v439_v6, %v437_v7  ;;  %v442_v11 = vmul.f32 %v441_v10, %v437_v7  ;;  %v631_v7 = vld [vmem:[%s1916_s17 + $0x8] sm:$0xff] }
  0xdc   : > { %451 = vxpose.xlu0.b32.start.end [1/1] (short) (narrow) %v440_v8, 64  ;;  %v630_v8 = vld [vmem:[%s1916_s17] sm:$0xff] }
  0xf9   : > { %638 = vxpose.xlu0.b32.start.end [1/1] (short) (narrow) %v442_v11, 64  ;;  %v2000_v11 = vld [vmem:[#allocation10 + $0x30] sm:$0xff] }
 0x15c   : > { %v467_v13 = vpop.trf.xlu0 }
 0x15d   : > { %1169 = vmatprep.mubr.msk.f32.mxu0 %vm483_vm1, %v467_v13 }
 0x160   : > { %v468_v14 = vpop.trf.xlu0 }
 0x161   : > { %1170 = vmatmul.mubr.msk.f32.vlgmr.msra.gmra.mrb[0].mxu0 %vm483_vm1, %v468_v14 }
 0x164   : > { %v469_v15 = vpop.trf.xlu0 }
 0x165   : > { %1172 = vmatprep.mubr.msk.f32.mxu0 %vm483_vm1, %v469_v15 }
 0x168   : > { %v470_v16 = vpop.trf.xlu0 }
 0x169   : > { %1173 = vmatmul.mubr.msk.f32.gmra.mrb[2].mxu0 %vm483_vm1, %v470_v16 }
 0x16c   : > { %v471_v17 = vpop.trf.xlu0 }
 0x16d   : > { %1175 = vmatprep.mubr.msk.f32.mxu0 %vm483_vm1, %v471_v17 }
 0x170   : > { %v472_v18 = vpop.trf.xlu0 }
 0x171   : > { %1176 = vmatmul.mubr.msk.f32.gmra.mrb[4].mxu0 %vm483_vm1, %v472_v18 }
 0x174   : > { %v473_v19 = vpop.trf.xlu0 }
 0x175   : > { %1178 = vmatprep.mubr.msk.f32.mxu0 %vm483_vm1, %v473_v19  ;;  %v633_v19 = vld [vmem:[%s1916_s17 + $0x18] sm:$0xff] }
 0x178   : > { %v474_v20 = vpop.trf.xlu0 }
 0x179   : > { %1179 = vmatmul.mubr.msk.f32.gmra.mrb[6].mxu0 %vm483_vm1, %v474_v20  ;;  %v632_v20 = vld [vmem:[%s1916_s17 + $0x10] sm:$0xff] }
 0x17c   : > { %v654_v21 = vpop.trf.xlu0 }
 0x17d   : > { %1183 = vmatprep.mubr.msk.f32.mxu1 %vm483_vm1, %v654_v21 }
 0x180   : > { %v655_v22 = vpop.trf.xlu0 }
 0x181   : > { %1184 = vmatmul.mubr.msk.f32.vlgmr.msra.gmra.mrb[0].mxu1 %vm483_vm1, %v655_v22 }
 0x184   : > { %v656_v23 = vpop.trf.xlu0 }
 0x185   : > { %1186 = vmatprep.mubr.msk.f32.mxu1 %vm483_vm1, %v656_v23 }
 0x188   : > { %v657_v24 = vpop.trf.xlu0 }
 0x189   : > { %1187 = vmatmul.mubr.msk.f32.gmra.mrb[2].mxu1 %vm483_vm1, %v657_v24 }
 0x18c   : > { %v658_v25 = vpop.trf.xlu0 }
 0x18d   : > { %1189 = vmatprep.mubr.msk.f32.mxu1 %vm483_vm1, %v658_v25 }
 0x190   : > { %v659_v26 = vpop.trf.xlu0 }
 0x191   : > { %1190 = vmatmul.mubr.msk.f32.gmra.mrb[4].mxu1 %vm483_vm1, %v659_v26 }
 0x194   : > { %v660_v27 = vpop.trf.xlu0 }
 0x195   : > { %1192 = vmatprep.mubr.msk.f32.mxu1 %vm483_vm1, %v660_v27 }
 0x198   : > { %v661_v28 = vpop.trf.xlu0 }
 0x199   : > { %1193 = vmatmul.mubr.msk.f32.gmra.mrb[6].mxu1 %vm483_vm1, %v661_v28 }
 0x234   : > { %v1171_v31 = vpop.f32.mrb[0].mxu0 }
 0x235   : > { %v614_v32 = vadd.f32 %v1171_v31, %v444_v29  ;;  %v574_v33 = vpop.f32.mrb[1].mxu0 }
 0x236   : > { %v613_v34 = vadd.f32 %v574_v33, %v443_v30 }
 0x237   : > { %623 = vst.msk [vmem:[%s1880_s29 + $0x8] sm:$0xff] %vm413_vm0, %v614_v32 }
 0x238   : > { %622 = vst.msk [vmem:[%s1880_s29] sm:$0xff] %vm413_vm0, %v613_v34 }
 0x23c   : > { %v1174_v38 = vpop.f32.mrb[2].mxu0 }
 0x23d   : > { %v616_v40 = vadd.f32 %v1174_v38, %v446_v35  ;;  %v584_v41 = vpop.f32.mrb[3].mxu0 }
 0x23e   : > { %v819_v42 = vld [vmem:[%s1880_s29 + $0x8] sm:$0xff]  ;;  %v615_v43 = vadd.f32 %v584_v41, %v445_v36 }
 0x23f   : > { %v835_v44 = vmul.f32 %v1942_v37, %v819_v42  ;;  %v818_v45 = vld [vmem:[%s1880_s29] sm:$0xff]  ;;  %625 = vst.msk [vmem:[%s1880_s29 + $0x18] sm:$0xff] %vm413_vm0, %v616_v40 }
 0x240   : > { %v834_v46 = vmul.f32 %v1944_v39, %v818_v45  ;;  %624 = vst.msk [vmem:[%s1880_s29 + $0x10] sm:$0xff] %vm413_vm0, %v615_v43 }
 0x241   : > { %843 = vst.msk [vmem:[%s1880_s29 + $0x8] sm:$0xff] %vm413_vm0, %v835_v44 }
 0x242   : > { %842 = vst.msk [vmem:[%s1880_s29] sm:$0xff] %vm413_vm0, %v834_v46 }
 0x244   : > { %v1177_v50 = vpop.f32.mrb[4].mxu0 }
 0x245   : > { %v618_v52 = vadd.f32 %v1177_v50, %v448_v47  ;;  %v594_v53 = vpop.f32.mrb[5].mxu0 }
 0x246   : > { %v821_v54 = vld [vmem:[%s1880_s29 + $0x18] sm:$0xff]  ;;  %v617_v55 = vadd.f32 %v594_v53, %v447_v48 }
 0x247   : > { %v837_v56 = vmul.f32 %v1960_v49, %v821_v54  ;;  %v820_v57 = vld [vmem:[%s1880_s29 + $0x10] sm:$0xff]  ;;  %627 = vst.msk [vmem:[%s1880_s29 + $0x28] sm:$0xff] %vm413_vm0, %v618_v52 }
 0x248   : > { %v836_v58 = vmul.f32 %v1962_v51, %v820_v57  ;;  %626 = vst.msk [vmem:[%s1880_s29 + $0x20] sm:$0xff] %vm413_vm0, %v617_v55 }
 0x249   : > { %845 = vst.msk [vmem:[%s1880_s29 + $0x18] sm:$0xff] %vm413_vm0, %v837_v56 }
 0x24a   : > { %844 = vst.msk [vmem:[%s1880_s29 + $0x10] sm:$0xff] %vm413_vm0, %v836_v58 }
 0x24c   : > { %v1180_v62 = vpop.f32.mrb[6].mxu0 }
 0x24d   : > { %v620_v0 = vadd.f32 %v1180_v62, %v450_v59  ;;  %v604_v1 = vpop.f32.mrb[7].mxu0 }
 0x24e   : > { %v823_v2 = vld [vmem:[%s1880_s29 + $0x28] sm:$0xff]  ;;  %v619_v3 = vadd.f32 %v604_v1, %v449_v60 }
 0x24f   : > { %v839_v4 = vmul.f32 %v1978_v61, %v823_v2  ;;  %v822_v5 = vld [vmem:[%s1880_s29 + $0x20] sm:$0xff]  ;;  %629 = vst.msk [vmem:[%s1880_s29 + $0x38] sm:$0xff] %vm413_vm0, %v620_v0 }
 0x250   : > { %v838_v6 = vmul.f32 %v1980_v63, %v822_v5  ;;  %628 = vst.msk [vmem:[%s1880_s29 + $0x30] sm:$0xff] %vm413_vm0, %v619_v3 }
 0x251   : > { %847 = vst.msk [vmem:[%s1880_s29 + $0x28] sm:$0xff] %vm413_vm0, %v839_v4 }
 0x252   : > { %846 = vst.msk [vmem:[%s1880_s29 + $0x20] sm:$0xff] %vm413_vm0, %v838_v6 }
 0x254   : > { %v1185_v10 = vpop.f32.mrb[0].mxu1 }
 0x255   : > { %v800_v12 = vadd.f32 %v1185_v10, %v631_v7  ;;  %v760_v13 = vpop.f32.mrb[1].mxu1 }
 0x256   : > { %v825_v14 = vld [vmem:[%s1880_s29 + $0x38] sm:$0xff]  ;;  %v799_v15 = vadd.f32 %v760_v13, %v630_v8 }
 0x257   : > { %v841_v16 = vmul.f32 %v1996_v9, %v825_v14  ;;  %v824_v17 = vld [vmem:[%s1880_s29 + $0x30] sm:$0xff]  ;;  %808 = vst.msk [vmem:[%s1916_s17 + $0x8] sm:$0xff] %vm413_vm0, %v800_v12 }
 0x258   : > { %v840_v18 = vmul.f32 %v2000_v11, %v824_v17  ;;  %807 = vst.msk [vmem:[%s1916_s17] sm:$0xff] %vm413_vm0, %v799_v15 }
 0x259   : > { %849 = vst.msk [vmem:[%s1880_s29 + $0x38] sm:$0xff] %vm413_vm0, %v841_v16 }
 0x25a   : > { %848 = vst.msk [vmem:[%s1880_s29 + $0x30] sm:$0xff] %vm413_vm0, %v840_v18 }
 0x25b   : > { %1464 = shalt.err (!%p1461_p6)
}
 0x25c   : > { %s1465_s20 = scalar_lea.hbm %s2012_s25, 1024  ;;  %s1469_s10 = scalar_lea.hbm %s2165_s5, 2048 }
 0x25d   : > { %p1466_p2 = scmp.ne.s32.totalorder %s2012_s25, %s1465_s20  ;;  %p1470_p8 = scmp.lt.u32.totalorder %s2012_s25, %s2165_s5 }
 0x25e   : > { %p1471_p11 = scmp.lt.u32.totalorder %s1469_s10, %s1465_s20  ;;  %p1473_p5 = scmp.lt.u32.totalorder %s1465_s20, %s2012_s25 }
 0x25f   : > { %p1467_p3 = pnand %p1466_p2, %p2195_p10 }
 0x260   : > { %p1472_p0 = por %p1471_p11, %p1470_p8 }
 0x261   : > { %p1468_p1 = pneg %p1467_p3 }
 0x262   : > { %p1474_p13 = por %p1473_p5, %p1472_p0 }
 0x264   : > { %p1475_p9 = pnand %p1474_p13, %p1468_p1 }
 0x266   : > { %1478 = shalt.err (!%p1475_p9)
}
 0x267   : > { %s1588_s29 = smov 128   ;;  %s1589_s4 = smov 8   ;;  %v1188_v21 = vpop.f32.mrb[2].mxu1  ;;  %v851_v24 = vld [vmem:[%s1916_s17 + $0x8] sm:$0xff]  ;;  %v850_v27 = vld [vmem:[%s1916_s17] sm:$0xff]  ;;  %v636_v40 = vld [vmem:[%s1916_s17 + $0x30] sm:$0xff] }
 0x268   : > { %1211 = dma.vmem_to_hbm [thread:$0]  (%p2195_p10), %s2014_s12, 1024, %s2012_s25, %s883_s2, %s1588_s29, %s1588_s29, %s1589_s4   ;;  %v802_v22 = vadd.f32 %v1188_v21, %v633_v19  ;;  %v770_v23 = vpop.f32.mrb[3].mxu1  ;;  %v867_v26 = vmul.f32 %v851_v24, %v1942_v37  ;;  %v866_v28 = vmul.f32 %v850_v27, %v1944_v39 }
 0x269   : > { %v801_v25 = vadd.f32 %v770_v23, %v632_v20  ;;  %v635_v29 = vld [vmem:[%s1916_s17 + $0x28] sm:$0xff]  ;;  %v634_v30 = vld [vmem:[%s1916_s17 + $0x20] sm:$0xff]  ;;  %v1191_v31 = vpop.f32.mrb[4].mxu1  ;;  %v637_v39 = vld [vmem:[%s1916_s17 + $0x38] sm:$0xff]  ;;  %s921_s12 = sshll.u32 %s1916_s17, 4  ;;  %s2102_s2 = scalar_lea.hbm %s2166_s6, %s1147_s19  ;;  %s2104_s12 = int_to_ptr.vmem [resolvable:$true] %s921_s12 }
 0x26a   : > { %810 = vst.msk [vmem:[%s1916_s17 + $0x18] sm:$0xff] %vm413_vm0, %v802_v22  ;;  %875 = vst.msk [vmem:[%s1916_s17 + $0x8] sm:$0xff] %vm413_vm0, %v867_v26  ;;  %v804_v32 = vadd.f32 %v1191_v31, %v635_v29  ;;  %v780_v33 = vpop.f32.mrb[5].mxu1  ;;  %s888_s14 = scalar_lea.sflag [#allocation13], %s1856_s11  ;;  %s1479_s9 = scalar_lea.vmem %s2104_s12, 1024 }
 0x26b   : > { %809 = vst.msk [vmem:[%s1916_s17 + $0x10] sm:$0xff] %vm413_vm0, %v801_v25  ;;  %874 = vst.msk [vmem:[%s1916_s17] sm:$0xff] %vm413_vm0, %v866_v28  ;;  %v803_v35 = vadd.f32 %v780_v33, %v634_v30  ;;  %p1480_p7 = scmp.ne.s32.totalorder %s2104_s12, %s1479_s9  ;;  %s1590_s24 = smov [#allocation12]  }
 0x26c   : > { %812 = vst.msk [vmem:[%s1916_s17 + $0x28] sm:$0xff] %vm413_vm0, %v804_v32  ;;  %v1194_v41 = vpop.f32.mrb[6].mxu1  ;;  %s1483_s13 = sshll.u32 %s1590_s24, 4  ;;  %s1484_s13 = int_to_ptr.vmem [resolvable:$false] %s1483_s13 }
 0x26d   : > { %811 = vst.msk [vmem:[%s1916_s17 + $0x20] sm:$0xff] %vm413_vm0, %v803_v35  ;;  %v806_v42 = vadd.f32 %v1194_v41, %v637_v39  ;;  %v790_v43 = vpop.f32.mrb[7].mxu1  ;;  %p1481_p12 = pnand %p1480_p7, %p2195_p10  ;;  %s1485_s19 = scalar_lea.vmem %s1484_s13, 2048 }
 0x26e   : > { %v805_v45 = vadd.f32 %v790_v43, %v636_v40  ;;  %p1486_p6 = scmp.lt.s32.totalorder %s2104_s12, %s1484_s13  ;;  %p1487_p2 = scmp.lt.s32.totalorder %s1485_s19, %s1479_s9 }
 0x26f   : > { %814 = vst.msk [vmem:[%s1916_s17 + $0x38] sm:$0xff] %vm413_vm0, %v806_v42  ;;  %p1482_p4 = pneg %p1481_p12 }
 0x270   : > { %813 = vst.msk [vmem:[%s1916_s17 + $0x30] sm:$0xff] %vm413_vm0, %v805_v45  ;;  %p1488_p3 = por %p1487_p2, %p1486_p6 }
 0x271   : > { %v853_v34 = vld [vmem:[%s1916_s17 + $0x18] sm:$0xff] }
 0x272   : > { %v869_v36 = vmul.f32 %v853_v34, %v1960_v49  ;;  %v852_v37 = vld [vmem:[%s1916_s17 + $0x10] sm:$0xff]  ;;  %p1489_p1 = pnand %p1488_p3, %p1482_p4 }
 0x273   : > { %v868_v38 = vmul.f32 %v852_v37, %v1962_v51  ;;  %v855_v44 = vld [vmem:[%s1916_s17 + $0x28] sm:$0xff] }
 0x274   : > { %877 = vst.msk [vmem:[%s1916_s17 + $0x18] sm:$0xff] %vm413_vm0, %v869_v36  ;;  %v871_v46 = vmul.f32 %v855_v44, %v1978_v61  ;;  %v854_v47 = vld [vmem:[%s1916_s17 + $0x20] sm:$0xff] }
 0x275   : > { %876 = vst.msk [vmem:[%s1916_s17 + $0x10] sm:$0xff] %vm413_vm0, %v868_v38  ;;  %v870_v48 = vmul.f32 %v854_v47, %v1980_v63 }
 0x276   : > { %879 = vst.msk [vmem:[%s1916_s17 + $0x28] sm:$0xff] %vm413_vm0, %v871_v46  ;;  %v857_v49 = vld [vmem:[%s1916_s17 + $0x38] sm:$0xff] }
 0x277   : > { %878 = vst.msk [vmem:[%s1916_s17 + $0x20] sm:$0xff] %vm413_vm0, %v870_v48  ;;  %v873_v50 = vmul.f32 %v857_v49, %v1996_v9  ;;  %v856_v51 = vld [vmem:[%s1916_s17 + $0x30] sm:$0xff] }
 0x278   : > { %v872_v52 = vmul.f32 %v856_v51, %v2000_v11 }
 0x279   : > { %881 = vst.msk [vmem:[%s1916_s17 + $0x38] sm:$0xff] %vm413_vm0, %v873_v50 }
 0x27a   : > { %880 = vst.msk [vmem:[%s1916_s17 + $0x30] sm:$0xff] %vm413_vm0, %v872_v52 }
 0x27b   : > { %1492 = shalt.err (!%p1489_p1)
}
 0x27c   : > { %s1493_s17 = scalar_lea.hbm %s2102_s2, 1024  ;;  %s1497_s16 = scalar_lea.hbm %s2166_s6, 2048 }
 0x27d   : > { %p1494_p8 = scmp.ne.s32.totalorder %s2102_s2, %s1493_s17  ;;  %p1498_p5 = scmp.lt.u32.totalorder %s2102_s2, %s2166_s6 }
 0x27e   : > { %p1499_p13 = scmp.lt.u32.totalorder %s1497_s16, %s1493_s17  ;;  %p1501_p7 = scmp.lt.u32.totalorder %s1493_s17, %s2102_s2 }
 0x27f   : > { %p1495_p11 = pnand %p1494_p8, %p2195_p10 }
 0x280   : > { %p1500_p9 = por %p1499_p13, %p1498_p5 }
 0x281   : > { %p1496_p0 = pneg %p1495_p11 }
 0x282   : > { %p1502_p12 = por %p1501_p7, %p1500_p9 }
 0x284   : > { %p1503_p4 = pnand %p1502_p12, %p1496_p0 }
 0x286   : > { %1506 = shalt.err (!%p1503_p4)
}
 0x287   : > { %1212 = dma.vmem_to_hbm [thread:$0]  (%p2195_p10), %s2104_s12, 1024, %s2102_s2, %s888_s14, %s1588_s29, %s1588_s29, %s1589_s4  }
 0x288 PF: > { %s936_s7 = sand.u32 1, %s1557_s21   ;;  %p2196_p6 = scmp.ne.s32.totalorder %s2178_s30, 0 }
 0x289   : > { %p2197_p2 = scmp.ge.s32.totalorder %s1577_s26, 2  ;;  %s937_s27 = scalar_lea.sflag [#allocation4], %s936_s7 }
 0x28b   : > { %p1233_p3 = pnand %p2197_p2, %p2196_p6 }
 0x28d   : > { %1548 = dma.done.wait (!%p1233_p3), %s937_s27, 1024  }
 0x28e   : > { %1550 = vsyncadd (!%p1233_p3), %s937_s27, 4294966272  ;;  %s946_s18 = scalar_lea.sflag [#allocation13], %s936_s7 }
 0x28f   : > { %1552 = dma.done.wait (!%p1233_p3), %s946_s18, 1024  }
 0x290   : > { %1554 = vsyncadd (!%p1233_p3), %s946_s18, 4294966272  ;;  %s30_s26 = sadd.s32 1, %s1577_s26   ;;  %s2198_s24 = sld [smem:[#allocation20_spill]] }
 0x291   : > { %p27_p1 = scmp.ge.s32.totalorder %s30_s26, 4   ;;  %s2199_s25 = sld [smem:[#allocation21_spill]] }
 0x292   : > { %s2200_s21 = smov %s1561_s22  ;;  %s2201_s22 = smov %s1565_s23 }
 0x293   : > { %s2202_s23 = smov %s1784_s8  ;;  %29 = sbr.rel (!%p27_p1) target bundleno = 15 (0xf), region = 137 }
 0x29a   :  { %951 = vsyncpa [#allocation3], 1 }
 0x29b   :  { %953 = vsyncpa [#allocation3 + $0x1], 1 }
 0x29c   :  { %954 = vsyncpa [#allocation6], 1 }
 0x29d   :  { %956 = vsyncpa [#allocation6 + $0x1], 1 }
 0x29e   :  { %957 = vsyncpa [#allocation9], 1 }
 0x29f   :  { %958 = vsyncpa [#allocation4], 1 }
 0x2a0   :  { %960 = vsyncpa [#allocation4 + $0x1], 1 }
 0x2a1   :  { %961 = vsyncpa [#allocation13], 1 }
 0x2a2   :  { %963 = vsyncpa [#allocation13 + $0x1], 1 }

</bundles_post_ra>
